<compile_context>
chip_gen: v6e
topology: v6e:2x2x1
jax: 0.10.0
libtpu: 0.0.40
codegen_flags: <defaults>
</compile_context>

<pallas_src>
import jax
import jax.numpy as jnp
from jax import lax
from jax.experimental import pallas as pl
from jax.experimental.pallas import tpu as pltpu

# ---------------------------- model constants ------------------------------ #
K = 5                     # conv kernel size
C1_OUT, C2_OUT = 10, 20   # conv output channels
H_IN = W_IN = 28          # input spatial size (required for the 320 flatten)
W1 = 12                   # spatial size after conv1 + pool   (12x12)
W2 = 4                    # spatial size after conv2 + pool   (4x4)
FC1_OUT = 50
LANE = 128                # padded lane width of every column block
FC1_PAD = 64              # fc1 output padded to a sublane-friendly width


# ------------------------------ fused kernel ------------------------------- #

def _fused_net_kernel(x_ref, m1_ref, b1_ref, m2_ref, b2_ref, g_ref, fb1_ref,
                      w2_ref, fb2_ref, o_ref):
    """Whole forward pass for one image (grid axis = batch)."""
    # ---- stage 1: conv1 (Toeplitz matmul over x) + 2x2 maxpool + bias + relu
    # x rows are ordered (y % 4, y // 4); lanes = x (padded 28->32).
    x_img = x_ref[0]                                                # (28, 32) bf16
    y1 = jnp.dot(x_img, m1_ref[...],
                 preferred_element_type=jnp.float32)                # (28, 10*128) f32

    planes = []                                    # h1 split by output-row parity
    for par in range(2):                           # parity of pooled row py = 2m+par
        best = None
        for a in range(2):                         # y pool phase
            for bx in range(2):                    # x pool phase
                acc = None
                for di in range(K):                # conv row tap
                    u = 2 * par + a + di           # input row = 4m + u
                    row0 = (u & 3) * 7 + (u >> 2)  # start row in the mod-4 layout
                    col0 = (di * 2 + bx) * LANE    # 128-aligned lane block
                    t = y1[row0:row0 + 6, col0:col0 + LANE]
                    acc = t if acc is None else acc + t
                best = acc if best is None else jnp.maximum(best, acc)
        plane = jnp.maximum(best + b1_ref[...], 0.0)                # (6, 128) f32
        planes.append(plane.astype(jnp.bfloat16))

    # ---- stage 2: conv2 + 2x2 maxpool + bias + relu
    m2 = m2_ref[...]
    y2 = [jnp.dot(p, m2, preferred_element_type=jnp.float32)        # (6, 10*128)
          for p in planes]

    best = None
    for a in range(2):
        for bx in range(2):
            acc = None
            for di in range(K):
                s = a + di                          # h1 row = 2*py2 + s
                col0 = (di * 2 + bx) * LANE
                t = y2[s & 1][(s >> 1):(s >> 1) + 4, col0:col0 + LANE]
                acc = t if acc is None else acc + t
            best = acc if best is None else jnp.maximum(best, acc)
    h2 = jnp.maximum(best + b2_ref[...], 0.0).astype(jnp.bfloat16)   # (4, 128)

    # ---- fc1 (flatten + permutation folded into the 4 row-blocks of G) + relu
    g = g_ref[...]                                                   # (512, 64) bf16
    h3 = None
    for yy in range(W2):
        t = jnp.dot(h2[yy:yy + 1, :], g[yy * LANE:(yy + 1) * LANE, :],
                    preferred_element_type=jnp.float32)              # (1, 64)
        h3 = t if h3 is None else h3 + t
    h3 = jnp.maximum(h3 + fb1_ref[...], 0.0).astype(jnp.bfloat16)    # (1, 64)

    # ---- fc2
    logits = jnp.dot(h3, w2_ref[...],
                     preferred_element_type=jnp.float32) + fb2_ref[...]  # (1, 128)
    o_ref[0] = logits


# --------------------- host-side weight / input packing -------------------- #

def _pack_params(params):
    """Build the lane-dense bf16 weight slabs consumed by the fused kernel."""
    (w1, b1), (w2, b2), (fw1, fb1), (fw2, fb2) = params
    bf16, f32 = jnp.bfloat16, jnp.float32

    # conv1 Toeplitz slab: rows = x_in (28, padded 32); 10 blocks of 128 lanes,
    # block (di, x-phase bx); within a block, lane = x_out*10 + c_out.
    xi = jnp.arange(32).reshape(32, 1, 1, 1, 1)
    di = jnp.arange(K).reshape(1, K, 1, 1, 1)
    bx = jnp.arange(2).reshape(1, 1, 2, 1, 1)
    px = jnp.arange(W1).reshape(1, 1, 1, W1, 1)
    co = jnp.arange(C1_OUT).reshape(1, 1, 1, 1, C1_OUT)
    dj = xi - 2 * px - bx
    vals = w1[co, 0, di, jnp.clip(dj, 0, K - 1)]
    m1 = jnp.where((dj >= 0) & (dj < K), vals, 0.0)                  # (32,5,2,12,10)
    m1 = m1.reshape(32, K, 2, W1 * C1_OUT)
    m1 = jnp.pad(m1, ((0, 0), (0, 0), (0, 0), (0, LANE - W1 * C1_OUT)))
    m1 = m1.reshape(32, K * 2 * LANE).astype(bf16)                   # (32, 1280)

    # conv2 Toeplitz slab: rows = x_in*10 + c_in (120, padded 128).
    xi = jnp.arange(W1).reshape(W1, 1, 1, 1, 1, 1)
    ci = jnp.arange(C1_OUT).reshape(1, C1_OUT, 1, 1, 1, 1)
    di = jnp.arange(K).reshape(1, 1, K, 1, 1, 1)
    bx = jnp.arange(2).reshape(1, 1, 1, 2, 1, 1)
    px = jnp.arange(W2).reshape(1, 1, 1, 1, W2, 1)
    co = jnp.arange(C2_OUT).reshape(1, 1, 1, 1, 1, C2_OUT)
    dj = xi - 2 * px - bx
    vals = w2[co, ci, di, jnp.clip(dj, 0, K - 1)]
    m2 = jnp.where((dj >= 0) & (dj < K), vals, 0.0)                  # (12,10,5,2,4,20)
    m2 = m2.reshape(W1 * C1_OUT, K, 2, W2 * C2_OUT)
    m2 = jnp.pad(m2, ((0, LANE - W1 * C1_OUT), (0, 0), (0, 0),
                      (0, LANE - W2 * C2_OUT)))
    m2 = m2.reshape(LANE, K * 2 * LANE).astype(bf16)                 # (128, 1280)

    # fc1 slab: 4 row-blocks (one per h2 row y), each 128 rows = (x*20+c, pad);
    # folds PyTorch's (C,H,W) flatten j = c*16 + y*4 + x.
    yy = jnp.arange(W2).reshape(W2, 1, 1, 1)
    xx = jnp.arange(W2).reshape(1, W2, 1, 1)
    cc = jnp.arange(C2_OUT).reshape(1, 1, C2_OUT, 1)
    nn = jnp.arange(FC1_OUT).reshape(1, 1, 1, FC1_OUT)
    g = fw1[nn, cc * (W2 * W2) + yy * W2 + xx]                       # (4,4,20,50)
    g = g.reshape(W2, W2 * C2_OUT, FC1_OUT)
    g = jnp.pad(g, ((0, 0), (0, LANE - W2 * C2_OUT), (0, FC1_PAD - FC1_OUT)))
    g = g.reshape(W2 * LANE, FC1_PAD).astype(bf16)                   # (512, 64)

    nc = fw2.shape[0]
    b1l = jnp.pad(jnp.tile(b1, W1), (0, LANE - W1 * C1_OUT)).reshape(1, LANE).astype(f32)
    b2l = jnp.pad(jnp.tile(b2, W2), (0, LANE - W2 * C2_OUT)).reshape(1, LANE).astype(f32)
    fb1p = jnp.pad(fb1, (0, FC1_PAD - FC1_OUT)).reshape(1, FC1_PAD).astype(f32)
    w2p = jnp.pad(fw2.T, ((0, FC1_PAD - FC1_OUT), (0, LANE - nc))).astype(bf16)  # (64,128)
    fb2p = jnp.pad(fb2, (0, LANE - nc)).reshape(1, LANE).astype(f32)
    return m1, b1l, m2, b2l, g, fb1p, w2p, fb2p


def _pack_input(x):
    """(B,1,28,28) -> (B,28,32) bf16 with rows reordered by (y % 4, y // 4)."""
    B = x.shape[0]
    xr = x[:, 0]                                                     # (B, 28, 28)
    xr = xr.reshape(B, 7, 4, W_IN).transpose(0, 2, 1, 3).reshape(B, H_IN, W_IN)
    xr = jnp.pad(xr, ((0, 0), (0, 0), (0, 32 - W_IN)))
    return xr.astype(jnp.bfloat16)


# -------------------------------- forward ---------------------------------- #

def net_forward(x, params):
    B = x.shape[0]
    num_classes = params[3][0].shape[0]
    xp = _pack_input(x)
    m1, b1l, m2, b2l, g, fb1p, w2p, fb2p = _pack_params(params)

    def full(arr):
        return pl.BlockSpec(arr.shape, lambda b: (0,) * arr.ndim)

    out = pl.pallas_call(
        _fused_net_kernel,
        out_shape=jax.ShapeDtypeStruct((B, 1, LANE), jnp.float32),
        grid=(B,),
        in_specs=[
            pl.BlockSpec((1, H_IN, 32), lambda b: (b, 0, 0)),   # per-image input
            full(m1), full(b1l), full(m2), full(b2l),           # resident weights
            full(g), full(fb1p), full(w2p), full(fb2p),
        ],
        out_specs=pl.BlockSpec((1, 1, LANE), lambda b: (b, 0, 0)),
        compiler_params=pltpu.CompilerParams(
            dimension_semantics=("parallel",)),                 # megacore on v7x
    )(xp, m1, b1l, m2, b2l, g, fb1p, w2p, fb2p)
    return out[:, 0, :num_classes]


# --------------------------- params & reference ---------------------------- #

def init_params(key, num_classes):
    ks = jax.random.split(key, 8)

    def u(k, shape, fan_in):
        bound = 1.0 / jnp.sqrt(jnp.float32(fan_in))
        return jax.random.uniform(k, shape, jnp.float32, -bound, bound)

    w1, b1 = u(ks[0], (10, 1, 5, 5), 25), u(ks[1], (10,), 25)
    w2, b2 = u(ks[2], (20, 10, 5, 5), 250), u(ks[3], (20,), 250)
    fw1, fb1 = u(ks[4], (50, 320), 320), u(ks[5], (50,), 320)
    fw2, fb2 = u(ks[6], (num_classes, 50), 50), u(ks[7], (num_classes,), 50)
    return (w1, b1), (w2, b2), (fw1, fb1), (fw2, fb2)


def reference_forward(x, params):
    """Pure-JAX (XLA) reference replicating the PyTorch forward."""
    (w1, b1), (w2, b2), (fw1, fb1), (fw2, fb2) = params
    dn = ('NCHW', 'OIHW', 'NCHW')
    y = lax.conv_general_dilated(x, w1, (1, 1), 'VALID', dimension_numbers=dn)
    y = y + b1.reshape(1, -1, 1, 1)
    y = lax.reduce_window(y, -jnp.inf, lax.max, (1, 1, 2, 2), (1, 1, 2, 2), 'VALID')
    y = jnp.maximum(y, 0.0)
    y = lax.conv_general_dilated(y, w2, (1, 1), 'VALID', dimension_numbers=dn)
    y = y + b2.reshape(1, -1, 1, 1)
    y = lax.reduce_window(y, -jnp.inf, lax.max, (1, 1, 2, 2), (1, 1, 2, 2), 'VALID')
    y = jnp.maximum(y, 0.0)
    y = y.reshape(y.shape[0], -1)
    y = jnp.maximum(y @ fw1.T + fb1, 0.0)
    return y @ fw2.T + fb2


# ---------------------------------- main ------------------------------------ #

if __name__ == "__main__":
    num_classes = 10
    key = jax.random.PRNGKey(0)
    kx, kp = jax.random.split(key)
    # MNIST-shaped input (28x28 required for the 320-dim flatten), batch=2.
    x = jax.random.normal(kx, (2, 1, 28, 28), jnp.float32)
    params = init_params(kp, num_classes)

    fwd = jax.jit(net_forward)
    out = jax.block_until_ready(fwd(x, params))
    ref = jax.block_until_ready(reference_forward(x, params))

    assert out.shape == (2, num_classes), out.shape
    err = float(jnp.max(jnp.abs(out - ref)))
    # bf16 operands with f32 accumulation -> few-percent tolerance.
    if not bool(jnp.allclose(out, ref, atol=5e-2, rtol=5e-2)):
        raise AssertionError(f"mismatch vs reference: max abs err {err}")
    print("KERNEL_OK")
</pallas_src>

<mosaic_0001>
module attributes {stable_mosaic.version = 11 : i64} {
  func.func @_fused_net_kernel(%arg0: i32, %arg1: memref<1x28x32xbf16, #tpu.memory_space<vmem>>, %arg2: memref<32x1280xbf16, #tpu.memory_space<vmem>>, %arg3: memref<1x128xf32, #tpu.memory_space<vmem>>, %arg4: memref<128x1280xbf16, #tpu.memory_space<vmem>>, %arg5: memref<1x128xf32, #tpu.memory_space<vmem>>, %arg6: memref<512x64xbf16, #tpu.memory_space<vmem>>, %arg7: memref<1x64xf32, #tpu.memory_space<vmem>>, %arg8: memref<64x128xbf16, #tpu.memory_space<vmem>>, %arg9: memref<1x128xf32, #tpu.memory_space<vmem>>, %arg10: memref<1x1x128xf32, #tpu.memory_space<vmem>>) attributes {dimension_semantics = [#tpu.dimension_semantics<parallel>], iteration_bounds = array<i64: 2>, scalar_prefetch = 0 : i64, scratch_operands = 0 : i64, tpu.core_type = #tpu.core_type<tc>, window_params = [{transform_indices = @transform_0, window_bounds = array<i64: 1, 28, 32>}, {pipeline_mode = #tpu.pipeline_mode<synchronous>, transform_indices = @transform_1, window_bounds = array<i64: 32, 1280>}, {pipeline_mode = #tpu.pipeline_mode<synchronous>, transform_indices = @transform_2, window_bounds = array<i64: 1, 128>}, {pipeline_mode = #tpu.pipeline_mode<synchronous>, transform_indices = @transform_3, window_bounds = array<i64: 128, 1280>}, {pipeline_mode = #tpu.pipeline_mode<synchronous>, transform_indices = @transform_4, window_bounds = array<i64: 1, 128>}, {pipeline_mode = #tpu.pipeline_mode<synchronous>, transform_indices = @transform_5, window_bounds = array<i64: 512, 64>}, {pipeline_mode = #tpu.pipeline_mode<synchronous>, transform_indices = @transform_6, window_bounds = array<i64: 1, 64>}, {pipeline_mode = #tpu.pipeline_mode<synchronous>, transform_indices = @transform_7, window_bounds = array<i64: 64, 128>}, {pipeline_mode = #tpu.pipeline_mode<synchronous>, transform_indices = @transform_8, window_bounds = array<i64: 1, 128>}, {transform_indices = @transform_9, window_bounds = array<i64: 1, 1, 128>}]} {
    %c0 = arith.constant 0 : index
    %c0_0 = arith.constant 0 : index
    %c0_1 = arith.constant 0 : index
    %0 = vector.load %arg1[%c0, %c0_0, %c0_1] : memref<1x28x32xbf16, #tpu.memory_space<vmem>>, vector<1x28x32xbf16>
    %1 = vector.shape_cast %0 : vector<1x28x32xbf16> to vector<28x32xbf16>
    %c0_2 = arith.constant 0 : index
    %c0_3 = arith.constant 0 : index
    %2 = vector.load %arg2[%c0_2, %c0_3] : memref<32x1280xbf16, #tpu.memory_space<vmem>>, vector<32x1280xbf16>
    %cst = arith.constant dense<0.000000e+00> : vector<28x1280xf32>
    %3 = tpu.matmul %1, %2, %cst {dimension_numbers = #tpu.dot_dimension_numbers<[1], [0], [0], [1], [0, 0, 1, 1], [], []>} : vector<28x32xbf16>, vector<32x1280xbf16>, vector<28x1280xf32> -> vector<28x1280xf32>
    %4 = vector.extract_strided_slice %3 {offsets = [0, 0], sizes = [6, 128], strides = [1, 1]} : vector<28x1280xf32> to vector<6x128xf32>
    %5 = vector.extract_strided_slice %3 {offsets = [7, 256], sizes = [6, 128], strides = [1, 1]} : vector<28x1280xf32> to vector<6x128xf32>
    %6 = arith.addf %4, %5 : vector<6x128xf32>
    %7 = vector.extract_strided_slice %3 {offsets = [14, 512], sizes = [6, 128], strides = [1, 1]} : vector<28x1280xf32> to vector<6x128xf32>
    %8 = arith.addf %6, %7 : vector<6x128xf32>
    %9 = vector.extract_strided_slice %3 {offsets = [21, 768], sizes = [6, 128], strides = [1, 1]} : vector<28x1280xf32> to vector<6x128xf32>
    %10 = arith.addf %8, %9 : vector<6x128xf32>
    %11 = vector.extract_strided_slice %3 {offsets = [1, 1024], sizes = [6, 128], strides = [1, 1]} : vector<28x1280xf32> to vector<6x128xf32>
    %12 = arith.addf %10, %11 : vector<6x128xf32>
    %13 = vector.extract_strided_slice %3 {offsets = [0, 128], sizes = [6, 128], strides = [1, 1]} : vector<28x1280xf32> to vector<6x128xf32>
    %14 = vector.extract_strided_slice %3 {offsets = [7, 384], sizes = [6, 128], strides = [1, 1]} : vector<28x1280xf32> to vector<6x128xf32>
    %15 = arith.addf %13, %14 : vector<6x128xf32>
    %16 = vector.extract_strided_slice %3 {offsets = [14, 640], sizes = [6, 128], strides = [1, 1]} : vector<28x1280xf32> to vector<6x128xf32>
    %17 = arith.addf %15, %16 : vector<6x128xf32>
    %18 = vector.extract_strided_slice %3 {offsets = [21, 896], sizes = [6, 128], strides = [1, 1]} : vector<28x1280xf32> to vector<6x128xf32>
    %19 = arith.addf %17, %18 : vector<6x128xf32>
    %20 = vector.extract_strided_slice %3 {offsets = [1, 1152], sizes = [6, 128], strides = [1, 1]} : vector<28x1280xf32> to vector<6x128xf32>
    %21 = arith.addf %19, %20 : vector<6x128xf32>
    %22 = arith.maximumf %12, %21 : vector<6x128xf32>
    %23 = vector.extract_strided_slice %3 {offsets = [7, 0], sizes = [6, 128], strides = [1, 1]} : vector<28x1280xf32> to vector<6x128xf32>
    %24 = vector.extract_strided_slice %3 {offsets = [14, 256], sizes = [6, 128], strides = [1, 1]} : vector<28x1280xf32> to vector<6x128xf32>
    %25 = arith.addf %23, %24 : vector<6x128xf32>
    %26 = vector.extract_strided_slice %3 {offsets = [21, 512], sizes = [6, 128], strides = [1, 1]} : vector<28x1280xf32> to vector<6x128xf32>
    %27 = arith.addf %25, %26 : vector<6x128xf32>
    %28 = vector.extract_strided_slice %3 {offsets = [1, 768], sizes = [6, 128], strides = [1, 1]} : vector<28x1280xf32> to vector<6x128xf32>
    %29 = arith.addf %27, %28 : vector<6x128xf32>
    %30 = vector.extract_strided_slice %3 {offsets = [8, 1024], sizes = [6, 128], strides = [1, 1]} : vector<28x1280xf32> to vector<6x128xf32>
    %31 = arith.addf %29, %30 : vector<6x128xf32>
    %32 = arith.maximumf %22, %31 : vector<6x128xf32>
    %33 = vector.extract_strided_slice %3 {offsets = [7, 128], sizes = [6, 128], strides = [1, 1]} : vector<28x1280xf32> to vector<6x128xf32>
    %34 = vector.extract_strided_slice %3 {offsets = [14, 384], sizes = [6, 128], strides = [1, 1]} : vector<28x1280xf32> to vector<6x128xf32>
    %35 = arith.addf %33, %34 : vector<6x128xf32>
    %36 = vector.extract_strided_slice %3 {offsets = [21, 640], sizes = [6, 128], strides = [1, 1]} : vector<28x1280xf32> to vector<6x128xf32>
    %37 = arith.addf %35, %36 : vector<6x128xf32>
    %38 = vector.extract_strided_slice %3 {offsets = [1, 896], sizes = [6, 128], strides = [1, 1]} : vector<28x1280xf32> to vector<6x128xf32>
    %39 = arith.addf %37, %38 : vector<6x128xf32>
    %40 = vector.extract_strided_slice %3 {offsets = [8, 1152], sizes = [6, 128], strides = [1, 1]} : vector<28x1280xf32> to vector<6x128xf32>
    %41 = arith.addf %39, %40 : vector<6x128xf32>
    %42 = arith.maximumf %32, %41 : vector<6x128xf32>
    %c0_4 = arith.constant 0 : index
    %c0_5 = arith.constant 0 : index
    %43 = vector.load %arg3[%c0_4, %c0_5] : memref<1x128xf32, #tpu.memory_space<vmem>>, vector<1x128xf32>
    %44 = vector.broadcast %43 : vector<1x128xf32> to vector<6x128xf32>
    %45 = arith.addf %42, %44 : vector<6x128xf32>
    %cst_6 = arith.constant 0.000000e+00 : f32
    %46 = vector.broadcast %cst_6 : f32 to vector<6x128xf32>
    %47 = arith.maximumf %45, %46 : vector<6x128xf32>
    %48 = arith.truncf %47 : vector<6x128xf32> to vector<6x128xbf16>
    %49 = vector.extract_strided_slice %3 {offsets = [14, 0], sizes = [6, 128], strides = [1, 1]} : vector<28x1280xf32> to vector<6x128xf32>
    %50 = vector.extract_strided_slice %3 {offsets = [21, 256], sizes = [6, 128], strides = [1, 1]} : vector<28x1280xf32> to vector<6x128xf32>
    %51 = arith.addf %49, %50 : vector<6x128xf32>
    %52 = vector.extract_strided_slice %3 {offsets = [1, 512], sizes = [6, 128], strides = [1, 1]} : vector<28x1280xf32> to vector<6x128xf32>
    %53 = arith.addf %51, %52 : vector<6x128xf32>
    %54 = vector.extract_strided_slice %3 {offsets = [8, 768], sizes = [6, 128], strides = [1, 1]} : vector<28x1280xf32> to vector<6x128xf32>
    %55 = arith.addf %53, %54 : vector<6x128xf32>
    %56 = vector.extract_strided_slice %3 {offsets = [15, 1024], sizes = [6, 128], strides = [1, 1]} : vector<28x1280xf32> to vector<6x128xf32>
    %57 = arith.addf %55, %56 : vector<6x128xf32>
    %58 = vector.extract_strided_slice %3 {offsets = [14, 128], sizes = [6, 128], strides = [1, 1]} : vector<28x1280xf32> to vector<6x128xf32>
    %59 = vector.extract_strided_slice %3 {offsets = [21, 384], sizes = [6, 128], strides = [1, 1]} : vector<28x1280xf32> to vector<6x128xf32>
    %60 = arith.addf %58, %59 : vector<6x128xf32>
    %61 = vector.extract_strided_slice %3 {offsets = [1, 640], sizes = [6, 128], strides = [1, 1]} : vector<28x1280xf32> to vector<6x128xf32>
    %62 = arith.addf %60, %61 : vector<6x128xf32>
    %63 = vector.extract_strided_slice %3 {offsets = [8, 896], sizes = [6, 128], strides = [1, 1]} : vector<28x1280xf32> to vector<6x128xf32>
    %64 = arith.addf %62, %63 : vector<6x128xf32>
    %65 = vector.extract_strided_slice %3 {offsets = [15, 1152], sizes = [6, 128], strides = [1, 1]} : vector<28x1280xf32> to vector<6x128xf32>
    %66 = arith.addf %64, %65 : vector<6x128xf32>
    %67 = arith.maximumf %57, %66 : vector<6x128xf32>
    %68 = vector.extract_strided_slice %3 {offsets = [21, 0], sizes = [6, 128], strides = [1, 1]} : vector<28x1280xf32> to vector<6x128xf32>
    %69 = vector.extract_strided_slice %3 {offsets = [1, 256], sizes = [6, 128], strides = [1, 1]} : vector<28x1280xf32> to vector<6x128xf32>
    %70 = arith.addf %68, %69 : vector<6x128xf32>
    %71 = vector.extract_strided_slice %3 {offsets = [8, 512], sizes = [6, 128], strides = [1, 1]} : vector<28x1280xf32> to vector<6x128xf32>
    %72 = arith.addf %70, %71 : vector<6x128xf32>
    %73 = vector.extract_strided_slice %3 {offsets = [15, 768], sizes = [6, 128], strides = [1, 1]} : vector<28x1280xf32> to vector<6x128xf32>
    %74 = arith.addf %72, %73 : vector<6x128xf32>
    %75 = vector.extract_strided_slice %3 {offsets = [22, 1024], sizes = [6, 128], strides = [1, 1]} : vector<28x1280xf32> to vector<6x128xf32>
    %76 = arith.addf %74, %75 : vector<6x128xf32>
    %77 = arith.maximumf %67, %76 : vector<6x128xf32>
    %78 = vector.extract_strided_slice %3 {offsets = [21, 128], sizes = [6, 128], strides = [1, 1]} : vector<28x1280xf32> to vector<6x128xf32>
    %79 = vector.extract_strided_slice %3 {offsets = [1, 384], sizes = [6, 128], strides = [1, 1]} : vector<28x1280xf32> to vector<6x128xf32>
    %80 = arith.addf %78, %79 : vector<6x128xf32>
    %81 = vector.extract_strided_slice %3 {offsets = [8, 640], sizes = [6, 128], strides = [1, 1]} : vector<28x1280xf32> to vector<6x128xf32>
    %82 = arith.addf %80, %81 : vector<6x128xf32>
    %83 = vector.extract_strided_slice %3 {offsets = [15, 896], sizes = [6, 128], strides = [1, 1]} : vector<28x1280xf32> to vector<6x128xf32>
    %84 = arith.addf %82, %83 : vector<6x128xf32>
    %85 = vector.extract_strided_slice %3 {offsets = [22, 1152], sizes = [6, 128], strides = [1, 1]} : vector<28x1280xf32> to vector<6x128xf32>
    %86 = arith.addf %84, %85 : vector<6x128xf32>
    %87 = arith.maximumf %77, %86 : vector<6x128xf32>
    %c0_7 = arith.constant 0 : index
    %c0_8 = arith.constant 0 : index
    %88 = vector.load %arg3[%c0_7, %c0_8] : memref<1x128xf32, #tpu.memory_space<vmem>>, vector<1x128xf32>
    %89 = vector.broadcast %88 : vector<1x128xf32> to vector<6x128xf32>
    %90 = arith.addf %87, %89 : vector<6x128xf32>
    %cst_9 = arith.constant 0.000000e+00 : f32
    %91 = vector.broadcast %cst_9 : f32 to vector<6x128xf32>
    %92 = arith.maximumf %90, %91 : vector<6x128xf32>
    %93 = arith.truncf %92 : vector<6x128xf32> to vector<6x128xbf16>
    %c0_10 = arith.constant 0 : index
    %c0_11 = arith.constant 0 : index
    %94 = vector.load %arg4[%c0_10, %c0_11] : memref<128x1280xbf16, #tpu.memory_space<vmem>>, vector<128x1280xbf16>
    %cst_12 = arith.constant dense<0.000000e+00> : vector<6x1280xf32>
    %95 = tpu.matmul %48, %94, %cst_12 {dimension_numbers = #tpu.dot_dimension_numbers<[1], [0], [0], [1], [0, 0, 1, 1], [], []>} : vector<6x128xbf16>, vector<128x1280xbf16>, vector<6x1280xf32> -> vector<6x1280xf32>
    %cst_13 = arith.constant dense<0.000000e+00> : vector<6x1280xf32>
    %96 = tpu.matmul %93, %94, %cst_13 {dimension_numbers = #tpu.dot_dimension_numbers<[1], [0], [0], [1], [0, 0, 1, 1], [], []>} : vector<6x128xbf16>, vector<128x1280xbf16>, vector<6x1280xf32> -> vector<6x1280xf32>
    %97 = vector.extract_strided_slice %95 {offsets = [0, 0], sizes = [4, 128], strides = [1, 1]} : vector<6x1280xf32> to vector<4x128xf32>
    %98 = vector.extract_strided_slice %96 {offsets = [0, 256], sizes = [4, 128], strides = [1, 1]} : vector<6x1280xf32> to vector<4x128xf32>
    %99 = arith.addf %97, %98 : vector<4x128xf32>
    %100 = vector.extract_strided_slice %95 {offsets = [1, 512], sizes = [4, 128], strides = [1, 1]} : vector<6x1280xf32> to vector<4x128xf32>
    %101 = arith.addf %99, %100 : vector<4x128xf32>
    %102 = vector.extract_strided_slice %96 {offsets = [1, 768], sizes = [4, 128], strides = [1, 1]} : vector<6x1280xf32> to vector<4x128xf32>
    %103 = arith.addf %101, %102 : vector<4x128xf32>
    %104 = vector.extract_strided_slice %95 {offsets = [2, 1024], sizes = [4, 128], strides = [1, 1]} : vector<6x1280xf32> to vector<4x128xf32>
    %105 = arith.addf %103, %104 : vector<4x128xf32>
    %106 = vector.extract_strided_slice %95 {offsets = [0, 128], sizes = [4, 128], strides = [1, 1]} : vector<6x1280xf32> to vector<4x128xf32>
    %107 = vector.extract_strided_slice %96 {offsets = [0, 384], sizes = [4, 128], strides = [1, 1]} : vector<6x1280xf32> to vector<4x128xf32>
    %108 = arith.addf %106, %107 : vector<4x128xf32>
    %109 = vector.extract_strided_slice %95 {offsets = [1, 640], sizes = [4, 128], strides = [1, 1]} : vector<6x1280xf32> to vector<4x128xf32>
    %110 = arith.addf %108, %109 : vector<4x128xf32>
    %111 = vector.extract_strided_slice %96 {offsets = [1, 896], sizes = [4, 128], strides = [1, 1]} : vector<6x1280xf32> to vector<4x128xf32>
    %112 = arith.addf %110, %111 : vector<4x128xf32>
    %113 = vector.extract_strided_slice %95 {offsets = [2, 1152], sizes = [4, 128], strides = [1, 1]} : vector<6x1280xf32> to vector<4x128xf32>
    %114 = arith.addf %112, %113 : vector<4x128xf32>
    %115 = arith.maximumf %105, %114 : vector<4x128xf32>
    %116 = vector.extract_strided_slice %96 {offsets = [0, 0], sizes = [4, 128], strides = [1, 1]} : vector<6x1280xf32> to vector<4x128xf32>
    %117 = vector.extract_strided_slice %95 {offsets = [1, 256], sizes = [4, 128], strides = [1, 1]} : vector<6x1280xf32> to vector<4x128xf32>
    %118 = arith.addf %116, %117 : vector<4x128xf32>
    %119 = vector.extract_strided_slice %96 {offsets = [1, 512], sizes = [4, 128], strides = [1, 1]} : vector<6x1280xf32> to vector<4x128xf32>
    %120 = arith.addf %118, %119 : vector<4x128xf32>
    %121 = vector.extract_strided_slice %95 {offsets = [2, 768], sizes = [4, 128], strides = [1, 1]} : vector<6x1280xf32> to vector<4x128xf32>
    %122 = arith.addf %120, %121 : vector<4x128xf32>
    %123 = vector.extract_strided_slice %96 {offsets = [2, 1024], sizes = [4, 128], strides = [1, 1]} : vector<6x1280xf32> to vector<4x128xf32>
    %124 = arith.addf %122, %123 : vector<4x128xf32>
    %125 = arith.maximumf %115, %124 : vector<4x128xf32>
    %126 = vector.extract_strided_slice %96 {offsets = [0, 128], sizes = [4, 128], strides = [1, 1]} : vector<6x1280xf32> to vector<4x128xf32>
    %127 = vector.extract_strided_slice %95 {offsets = [1, 384], sizes = [4, 128], strides = [1, 1]} : vector<6x1280xf32> to vector<4x128xf32>
    %128 = arith.addf %126, %127 : vector<4x128xf32>
    %129 = vector.extract_strided_slice %96 {offsets = [1, 640], sizes = [4, 128], strides = [1, 1]} : vector<6x1280xf32> to vector<4x128xf32>
    %130 = arith.addf %128, %129 : vector<4x128xf32>
    %131 = vector.extract_strided_slice %95 {offsets = [2, 896], sizes = [4, 128], strides = [1, 1]} : vector<6x1280xf32> to vector<4x128xf32>
    %132 = arith.addf %130, %131 : vector<4x128xf32>
    %133 = vector.extract_strided_slice %96 {offsets = [2, 1152], sizes = [4, 128], strides = [1, 1]} : vector<6x1280xf32> to vector<4x128xf32>
    %134 = arith.addf %132, %133 : vector<4x128xf32>
    %135 = arith.maximumf %125, %134 : vector<4x128xf32>
    %c0_14 = arith.constant 0 : index
    %c0_15 = arith.constant 0 : index
    %136 = vector.load %arg5[%c0_14, %c0_15] : memref<1x128xf32, #tpu.memory_space<vmem>>, vector<1x128xf32>
    %137 = vector.broadcast %136 : vector<1x128xf32> to vector<4x128xf32>
    %138 = arith.addf %135, %137 : vector<4x128xf32>
    %cst_16 = arith.constant 0.000000e+00 : f32
    %139 = vector.broadcast %cst_16 : f32 to vector<4x128xf32>
    %140 = arith.maximumf %138, %139 : vector<4x128xf32>
    %141 = arith.truncf %140 : vector<4x128xf32> to vector<4x128xbf16>
    %c0_17 = arith.constant 0 : index
    %c0_18 = arith.constant 0 : index
    %142 = vector.load %arg6[%c0_17, %c0_18] : memref<512x64xbf16, #tpu.memory_space<vmem>>, vector<512x64xbf16>
    %143 = vector.extract_strided_slice %141 {offsets = [0, 0], sizes = [1, 128], strides = [1, 1]} : vector<4x128xbf16> to vector<1x128xbf16>
    %144 = vector.extract_strided_slice %142 {offsets = [0, 0], sizes = [128, 64], strides = [1, 1]} : vector<512x64xbf16> to vector<128x64xbf16>
    %cst_19 = arith.constant dense<0.000000e+00> : vector<1x64xf32>
    %145 = tpu.matmul %143, %144, %cst_19 {dimension_numbers = #tpu.dot_dimension_numbers<[1], [0], [0], [1], [0, 0, 1, 1], [], []>} : vector<1x128xbf16>, vector<128x64xbf16>, vector<1x64xf32> -> vector<1x64xf32>
    %146 = vector.extract_strided_slice %141 {offsets = [1, 0], sizes = [1, 128], strides = [1, 1]} : vector<4x128xbf16> to vector<1x128xbf16>
    %147 = vector.extract_strided_slice %142 {offsets = [128, 0], sizes = [128, 64], strides = [1, 1]} : vector<512x64xbf16> to vector<128x64xbf16>
    %cst_20 = arith.constant dense<0.000000e+00> : vector<1x64xf32>
    %148 = tpu.matmul %146, %147, %cst_20 {dimension_numbers = #tpu.dot_dimension_numbers<[1], [0], [0], [1], [0, 0, 1, 1], [], []>} : vector<1x128xbf16>, vector<128x64xbf16>, vector<1x64xf32> -> vector<1x64xf32>
    %149 = arith.addf %145, %148 : vector<1x64xf32>
    %150 = vector.extract_strided_slice %141 {offsets = [2, 0], sizes = [1, 128], strides = [1, 1]} : vector<4x128xbf16> to vector<1x128xbf16>
    %151 = vector.extract_strided_slice %142 {offsets = [256, 0], sizes = [128, 64], strides = [1, 1]} : vector<512x64xbf16> to vector<128x64xbf16>
    %cst_21 = arith.constant dense<0.000000e+00> : vector<1x64xf32>
    %152 = tpu.matmul %150, %151, %cst_21 {dimension_numbers = #tpu.dot_dimension_numbers<[1], [0], [0], [1], [0, 0, 1, 1], [], []>} : vector<1x128xbf16>, vector<128x64xbf16>, vector<1x64xf32> -> vector<1x64xf32>
    %153 = arith.addf %149, %152 : vector<1x64xf32>
    %154 = vector.extract_strided_slice %141 {offsets = [3, 0], sizes = [1, 128], strides = [1, 1]} : vector<4x128xbf16> to vector<1x128xbf16>
    %155 = vector.extract_strided_slice %142 {offsets = [384, 0], sizes = [128, 64], strides = [1, 1]} : vector<512x64xbf16> to vector<128x64xbf16>
    %cst_22 = arith.constant dense<0.000000e+00> : vector<1x64xf32>
    %156 = tpu.matmul %154, %155, %cst_22 {dimension_numbers = #tpu.dot_dimension_numbers<[1], [0], [0], [1], [0, 0, 1, 1], [], []>} : vector<1x128xbf16>, vector<128x64xbf16>, vector<1x64xf32> -> vector<1x64xf32>
    %157 = arith.addf %153, %156 : vector<1x64xf32>
    %c0_23 = arith.constant 0 : index
    %c0_24 = arith.constant 0 : index
    %158 = vector.load %arg7[%c0_23, %c0_24] : memref<1x64xf32, #tpu.memory_space<vmem>>, vector<1x64xf32>
    %159 = arith.addf %157, %158 : vector<1x64xf32>
    %cst_25 = arith.constant 0.000000e+00 : f32
    %160 = vector.broadcast %cst_25 : f32 to vector<1x64xf32>
    %161 = arith.maximumf %159, %160 : vector<1x64xf32>
    %162 = arith.truncf %161 : vector<1x64xf32> to vector<1x64xbf16>
    %c0_26 = arith.constant 0 : index
    %c0_27 = arith.constant 0 : index
    %163 = vector.load %arg8[%c0_26, %c0_27] : memref<64x128xbf16, #tpu.memory_space<vmem>>, vector<64x128xbf16>
    %cst_28 = arith.constant dense<0.000000e+00> : vector<1x128xf32>
    %164 = tpu.matmul %162, %163, %cst_28 {dimension_numbers = #tpu.dot_dimension_numbers<[1], [0], [0], [1], [0, 0, 1, 1], [], []>} : vector<1x64xbf16>, vector<64x128xbf16>, vector<1x128xf32> -> vector<1x128xf32>
    %c0_29 = arith.constant 0 : index
    %c0_30 = arith.constant 0 : index
    %165 = vector.load %arg9[%c0_29, %c0_30] : memref<1x128xf32, #tpu.memory_space<vmem>>, vector<1x128xf32>
    %166 = arith.addf %164, %165 : vector<1x128xf32>
    %c0_31 = arith.constant 0 : index
    %c0_32 = arith.constant 0 : index
    %c0_33 = arith.constant 0 : index
    %167 = vector.load %arg10[%c0_31, %c0_32, %c0_33] : memref<1x1x128xf32, #tpu.memory_space<vmem>>, vector<1x1x128xf32>
    %168 = vector.shape_cast %167 : vector<1x1x128xf32> to vector<1x128xf32>
    %169 = vector.shape_cast %166 : vector<1x128xf32> to vector<1x1x128xf32>
    tpu.vector_store %arg10[%c0_31, %c0_32, %c0_33], %169 {strides = array<i32>} : memref<1x1x128xf32, #tpu.memory_space<vmem>>, vector<1x1x128xf32>,
    return
  }
  func.func @transform_0(%arg0: i32) -> (i32, i32, i32) {
    %c0_i32 = arith.constant 0 : i32
    %c0_i32_0 = arith.constant 0 : i32
    %c0_i32_1 = arith.constant 0 : i32
    return %arg0, %c0_i32, %c0_i32_0 : i32, i32, i32
  }
  func.func @transform_1(%arg0: i32) -> (i32, i32) {
    %c0_i32 = arith.constant 0 : i32
    %c0_i32_0 = arith.constant 0 : i32
    %c0_i32_1 = arith.constant 0 : i32
    return %c0_i32, %c0_i32_0 : i32, i32
  }
  func.func @transform_2(%arg0: i32) -> (i32, i32) {
    %c0_i32 = arith.constant 0 : i32
    %c0_i32_0 = arith.constant 0 : i32
    %c0_i32_1 = arith.constant 0 : i32
    return %c0_i32, %c0_i32_0 : i32, i32
  }
  func.func @transform_3(%arg0: i32) -> (i32, i32) {
    %c0_i32 = arith.constant 0 : i32
    %c0_i32_0 = arith.constant 0 : i32
    %c0_i32_1 = arith.constant 0 : i32
    return %c0_i32, %c0_i32_0 : i32, i32
  }
  func.func @transform_4(%arg0: i32) -> (i32, i32) {
    %c0_i32 = arith.constant 0 : i32
    %c0_i32_0 = arith.constant 0 : i32
    %c0_i32_1 = arith.constant 0 : i32
    return %c0_i32, %c0_i32_0 : i32, i32
  }
  func.func @transform_5(%arg0: i32) -> (i32, i32) {
    %c0_i32 = arith.constant 0 : i32
    %c0_i32_0 = arith.constant 0 : i32
    %c0_i32_1 = arith.constant 0 : i32
    return %c0_i32, %c0_i32_0 : i32, i32
  }
  func.func @transform_6(%arg0: i32) -> (i32, i32) {
    %c0_i32 = arith.constant 0 : i32
    %c0_i32_0 = arith.constant 0 : i32
    %c0_i32_1 = arith.constant 0 : i32
    return %c0_i32, %c0_i32_0 : i32, i32
  }
  func.func @transform_7(%arg0: i32) -> (i32, i32) {
    %c0_i32 = arith.constant 0 : i32
    %c0_i32_0 = arith.constant 0 : i32
    %c0_i32_1 = arith.constant 0 : i32
    return %c0_i32, %c0_i32_0 : i32, i32
  }
  func.func @transform_8(%arg0: i32) -> (i32, i32) {
    %c0_i32 = arith.constant 0 : i32
    %c0_i32_0 = arith.constant 0 : i32
    %c0_i32_1 = arith.constant 0 : i32
    return %c0_i32, %c0_i32_0 : i32, i32
  }
  func.func @transform_9(%arg0: i32) -> (i32, i32, i32) {
    %c0_i32 = arith.constant 0 : i32
    %c0_i32_0 = arith.constant 0 : i32
    %c0_i32_1 = arith.constant 0 : i32
    return %arg0, %c0_i32, %c0_i32_0 : i32, i32, i32
  }
}

</mosaic_0001>

<bundles_post_ra>
// kernel: squeeze.0
= control target key start
LH: loop header
LB: loop body
LE: loop exit
PB: predicated region body
PF: predicated region fallthrough
CT: control target
= control target key end

     0   :  { %vm131_vm0 = vcmask 228352   ;;  %v351_v18 = vmov 0.0   ;;  %s430_s0 = inlined_call_operand.vmem [shape: bf16[2,28,28], index: 0, kind: input, shape index: {}]   ;;  %s431_s1 = inlined_call_operand.vmem [shape: bf16[2,7,4,28], index: 1, kind: output, shape index: {}]  }
   0x1   :  { %v347_v0 = vld [vmem:[%s430_s0 + $0x18] sm:$0xff]   ;;  %v348_v1 = vld [vmem:[%s430_s0 + $0x10] sm:$0xff]   ;;  %v349_v2 = vld [vmem:[%s430_s0 + $0x8] sm:$0xff]  }
   0x2   :  { %v333_v3 = vunpack.c.l.bf16 %v347_v0  ;;  %v334_v4 = vunpack.c.h.bf16 %v347_v0  ;;  %v337_v5 = vunpack.c.l.bf16 %v348_v1  ;;  %v338_v6 = vunpack.c.h.bf16 %v348_v1  ;;  %v344_v7 = vld [vmem:[%s430_s0] sm:$0xff]  }
   0x3   :  { %v341_v8 = vunpack.c.l.bf16 %v349_v2  ;;  %v342_v9 = vunpack.c.h.bf16 %v349_v2  ;;  %v345_v10 = vunpack.c.l.bf16 %v344_v7  ;;  %v346_v11 = vunpack.c.h.bf16 %v344_v7 }
   0x4   :  { %21 = vst [vmem:[#allocation1 + $0x8] sm:$0xff] %v334_v4  ;;  %158 = vst.msk [vmem:[#allocation0 + $0x38] sm:$0xf] %vm131_vm0, %v337_v5  }
   0x5   :  { %160 = vst.msk [vmem:[#allocation0 + $0x3c] sm:$0xf0] %vm131_vm0, %v337_v5   ;;  %165 = vst.msk [vmem:[#allocation0 + $0x48] sm:$0xf] %vm131_vm0, %v338_v6  }
   0x6   :  { %167 = vst.msk [vmem:[#allocation0 + $0x4c] sm:$0xf0] %vm131_vm0, %v338_v6   ;;  %172 = vst.msk [vmem:[#allocation0 + $0x58] sm:$0xf] %vm131_vm0, %v333_v3  }
   0x7   :  { %174 = vst.msk [vmem:[#allocation0 + $0x5c] sm:$0xf0] %vm131_vm0, %v333_v3   ;;  %85 = vst [vmem:[#allocation1 + $0x30] sm:$0xff] %v342_v9 }
   0x8   :  { %132 = vst.msk [vmem:[#allocation0] sm:$0xf] %vm131_vm0, %v345_v10   ;;  %134 = vst.msk [vmem:[#allocation0 + $0x4] sm:$0xf0] %vm131_vm0, %v345_v10  }
   0x9   :  { %139 = vst.msk [vmem:[#allocation0 + $0x10] sm:$0xf] %vm131_vm0, %v346_v11   ;;  %141 = vst.msk [vmem:[#allocation0 + $0x14] sm:$0xf0] %vm131_vm0, %v346_v11  }
   0xa   :  { %146 = vst.msk [vmem:[#allocation0 + $0x20] sm:$0xf] %vm131_vm0, %v341_v8   ;;  %148 = vst.msk [vmem:[#allocation0 + $0x24] sm:$0xf0] %vm131_vm0, %v341_v8  }
   0xb   :  { %v176_v12 = vld [vmem:[#allocation1 + $0x8] sm:$0xf]  }
   0xc   :  { %v238_v13 = vld [vmem:[#allocation0 + $0x38] sm:$0xf]  ;;  %v246_v14 = vld [vmem:[#allocation0 + $0x40] sm:$0xf]  ;;  %179 = vst.msk [vmem:[#allocation0 + $0x68] sm:$0xf] %vm131_vm0, %v176_v12  }
   0xd   :  { %v239_v19 = vpack.c.bf16 %v351_v18, %v238_v13  ;;  %v247_v20 = vpack.c.bf16 %v351_v18, %v246_v14  ;;  %v254_v30 = vld [vmem:[#allocation0 + $0x48] sm:$0xf]  ;;  %v262_v31 = vld [vmem:[#allocation0 + $0x50] sm:$0xf]  ;;  %v270_v35 = vld [vmem:[#allocation0 + $0x58] sm:$0xf] }
   0xe   :  { %v150_v15 = vld [vmem:[#allocation1 + $0x30] sm:$0xf]   ;;  %v255_v33 = vpack.c.bf16 %v351_v18, %v254_v30  ;;  %v263_v34 = vpack.c.bf16 %v351_v18, %v262_v31  ;;  %v271_v37 = vpack.c.bf16 %v351_v18, %v270_v35 }
   0xf   :  { %v185_v16 = vld [vmem:[#allocation0] sm:$0xf]  ;;  %v191_v17 = vld [vmem:[#allocation0 + $0x8] sm:$0xf]  ;;  %153 = vst.msk [vmem:[#allocation0 + $0x30] sm:$0xf] %vm131_vm0, %v150_v15  }
  0x10   :  { %v186_v21 = vpack.c.bf16 %v351_v18, %v185_v16  ;;  %v192_v22 = vpack.c.bf16 %v351_v18, %v191_v17  ;;  %v198_v23 = vld [vmem:[#allocation0 + $0x10] sm:$0xf]  ;;  %v206_v24 = vld [vmem:[#allocation0 + $0x18] sm:$0xf]  ;;  %324 = vst [vmem:[%s431_s1 + $0xe] sm:$0x3] %v239_v19 }
  0x11   :  { %v214_v25 = vld [vmem:[#allocation0 + $0x20] sm:$0xf]  ;;  %v199_v26 = vpack.c.bf16 %v351_v18, %v198_v23  ;;  %v207_v27 = vpack.c.bf16 %v351_v18, %v206_v24  ;;  %v222_v29 = vld [vmem:[#allocation0 + $0x28] sm:$0xf]  ;;  %325 = vst [vmem:[%s431_s1 + $0x10] sm:$0x3] %v247_v20 }
  0x12   :  { %v215_v28 = vpack.c.bf16 %v351_v18, %v214_v25  ;;  %189 = vst [vmem:[%s431_s1] sm:$0x3] %v186_v21  ;;  %318 = vst [vmem:[%s431_s1 + $0x2] sm:$0x3] %v192_v22  ;;  %v223_v32 = vpack.c.bf16 %v351_v18, %v222_v29  ;;  %v278_v36 = vld [vmem:[#allocation0 + $0x60] sm:$0xf] }
  0x13   :  { %319 = vst [vmem:[%s431_s1 + $0x4] sm:$0x3] %v199_v26  ;;  %320 = vst [vmem:[%s431_s1 + $0x6] sm:$0x3] %v207_v27  ;;  %v279_v38 = vpack.c.bf16 %v351_v18, %v278_v36  ;;  %v286_v39 = vld [vmem:[#allocation0 + $0x68] sm:$0xf] }
  0x14   :  { %321 = vst [vmem:[%s431_s1 + $0x8] sm:$0x3] %v215_v28  ;;  %322 = vst [vmem:[%s431_s1 + $0xa] sm:$0x3] %v223_v32  ;;  %v287_v41 = vpack.c.bf16 %v351_v18, %v286_v39 }
  0x15   :  { %326 = vst [vmem:[%s431_s1 + $0x12] sm:$0x3] %v255_v33  ;;  %327 = vst [vmem:[%s431_s1 + $0x14] sm:$0x3] %v263_v34 }
  0x16   :  { %328 = vst [vmem:[%s431_s1 + $0x16] sm:$0x3] %v271_v37  ;;  %329 = vst [vmem:[%s431_s1 + $0x18] sm:$0x3] %v279_v38  ;;  %v230_v40 = vld [vmem:[#allocation0 + $0x30] sm:$0xf] }
  0x17   :  { %v231_v42 = vpack.c.bf16 %v351_v18, %v230_v40  ;;  %330 = vst [vmem:[%s431_s1 + $0x1a] sm:$0x3] %v287_v41 }
  0x19   :  { %323 = vst [vmem:[%s431_s1 + $0xc] sm:$0x3] %v231_v42 }

// kernel: tile.13
= control target key start
LH: loop header
LB: loop body
LE: loop exit
PB: predicated region body
PF: predicated region fallthrough
CT: control target
= control target key end

     0   :  { %s28_s0 = inlined_call_operand.vmem [shape: f32[10], index: 0, kind: input, shape index: {}]   ;;  %s29_s1 = inlined_call_operand.vmem [shape: f32[12,10], index: 1, kind: output, shape index: {}]  }
   0x1   :  { %v4_v0 = vld [vmem:[%s28_s0] ss:$0 sm:$0xff] }
   0x2   :  { %5 = vst [vmem:[%s29_s1] sm:$0xff] %v4_v0  ;;  %8 = vst [vmem:[%s29_s1 + $0x8] sm:$0xff] %v4_v0 }

// kernel: tile.14
= control target key start
LH: loop header
LB: loop body
LE: loop exit
PB: predicated region body
PF: predicated region fallthrough
CT: control target
= control target key end

     0   :  { %s101_s10 = smov 110   ;;  %s102_s11 = smov 90   ;;  %vm3_vm0 = vcmask 80896   ;;  %vm9_vm1 = vcmask 982896   ;;  %vm15_vm2 = vcmask 900896   ;;  %vm21_vm3 = vcmask 818896   ;;  %s161_s0 = inlined_call_operand.vmem [shape: f32[12,10], index: 0, kind: input, shape index: {}]   ;;  %s162_s1 = inlined_call_operand.vmem [shape: f32[120], index: 1, kind: output, shape index: {}]  }
   0x1   :  { %v79_v0 = vld [vmem:[%s161_s0 + $0xb] sm:$0x1]   ;;  %v81_v1 = vld [vmem:[%s161_s0 + $0x9] sm:$0x1]   ;;  %v80_v2 = vld [vmem:[%s161_s0 + $0xa] sm:$0x1]  }
   0x2   :  { %7 = vrot.lane.b32.xlu0 %v79_v0, %s101_s10  ;;  %19 = vrot.lane.b32.xlu1 %v81_v1, %s102_s11  ;;  %v82_v3 = vld [vmem:[%s161_s0 + $0x8] sm:$0x1]   ;;  %s103_s16 = smov 100   ;;  %s104_s17 = smov 80   ;;  %v83_v4 = vld [vmem:[%s161_s0 + $0x7] sm:$0x1]  }
   0x3   :  { %v2_v5 = vld [vmem:[%s161_s0] sm:$0x1]   ;;  %v84_v6 = vld [vmem:[%s161_s0 + $0x6] sm:$0x1]   ;;  %s105_s24 = smov 70   ;;  %s106_s25 = smov 60  }
   0x4   :  { %4 = vst.msk [vmem:[#allocation0] sm:$0x1] %vm3_vm0, %v2_v5   ;;  %v85_v7 = vld [vmem:[%s161_s0 + $0x5] sm:$0x1]   ;;  %v86_v8 = vld [vmem:[%s161_s0 + $0x4] sm:$0x1]  }
   0x5   :  { %s107_s30 = smov 50   ;;  %s108_s2 = smov 40   ;;  %v87_v9 = vld [vmem:[%s161_s0 + $0x3] sm:$0x1]   ;;  %v88_v10 = vld [vmem:[%s161_s0 + $0x2] sm:$0x1]  }
   0x6   :  { %13 = vrot.lane.b32.xlu0 %v80_v2, %s103_s16  ;;  %25 = vrot.lane.b32.xlu1 %v82_v3, %s104_s17  ;;  %s109_s7 = smov 30   ;;  %s110_s8 = smov 20   ;;  %v89_v11 = vld [vmem:[%s161_s0 + $0x1] sm:$0x1]   ;;  %vm27_vm4 = vcmask 736896   ;;  %vm33_vm5 = vcmask 654896  }
   0x7   :  { %s111_s0 = smov 10   ;;  %vm39_vm6 = vcmask 572896   ;;  %vm45_vm7 = vcmask 490896   ;;  %vm51_vm8 = vcmask 408896   ;;  %vm57_vm9 = vcmask 326896  }
   0x8   :  { %vm63_vm10 = vcmask 244896   ;;  %vm69_vm11 = vcmask 162896  }
   0xa   :  { %31 = vrot.lane.b32.xlu0 %v83_v4, %s105_s24  ;;  %37 = vrot.lane.b32.xlu1 %v84_v6, %s106_s25 }
   0xe   :  { %43 = vrot.lane.b32.xlu0 %v85_v7, %s107_s30  ;;  %49 = vrot.lane.b32.xlu1 %v86_v8, %s108_s2 }
  0x12   :  { %55 = vrot.lane.b32.xlu0 %v87_v9, %s109_s7  ;;  %61 = vrot.lane.b32.xlu1 %v88_v10, %s110_s8 }
  0x16   :  { %67 = vrot.lane.b32.xlu0 %v89_v11, %s111_s0 }
  0x74   :  { %v8_v12 = vpop.permute.xlu0 %7   ;;  %v20_v13 = vpop.permute.xlu1 %19  }
  0x75   :  { %10 = vst.msk [vmem:[#allocation0] sm:$0x1] %vm9_vm1, %v8_v12  }
  0x78   :  { %v14_v14 = vpop.permute.xlu0 %13   ;;  %v26_v15 = vpop.permute.xlu1 %25  }
  0x79   :  { %16 = vst.msk [vmem:[#allocation0] sm:$0x1] %vm15_vm2, %v14_v14  }
  0x7a   :  { %22 = vst.msk [vmem:[#allocation0] sm:$0x1] %vm21_vm3, %v20_v13  }
  0x7b   :  { %28 = vst.msk [vmem:[#allocation0] sm:$0x1] %vm27_vm4, %v26_v15  }
  0x7c   :  { %v32_v16 = vpop.permute.xlu0 %31   ;;  %v38_v17 = vpop.permute.xlu1 %37  }
  0x7d   :  { %34 = vst.msk [vmem:[#allocation0] sm:$0x1] %vm33_vm5, %v32_v16  }
  0x7e   :  { %40 = vst.msk [vmem:[#allocation0] sm:$0x1] %vm39_vm6, %v38_v17  }
  0x80   :  { %v44_v18 = vpop.permute.xlu0 %43   ;;  %v50_v19 = vpop.permute.xlu1 %49  }
  0x81   :  { %46 = vst.msk [vmem:[#allocation0] sm:$0x1] %vm45_vm7, %v44_v18  }
  0x82   :  { %52 = vst.msk [vmem:[#allocation0] sm:$0x1] %vm51_vm8, %v50_v19  }
  0x84   :  { %v56_v20 = vpop.permute.xlu0 %55   ;;  %v62_v21 = vpop.permute.xlu1 %61  }
  0x85   :  { %58 = vst.msk [vmem:[#allocation0] sm:$0x1] %vm57_vm9, %v56_v20  }
  0x86   :  { %64 = vst.msk [vmem:[#allocation0] sm:$0x1] %vm63_vm10, %v62_v21  }
  0x88   :  { %v68_v22 = vpop.permute.xlu0 %67  }
  0x89   :  { %70 = vst.msk [vmem:[#allocation0] sm:$0x1] %vm69_vm11, %v68_v22  }
  0x90   :  { %v75_v23 = vld [vmem:[#allocation0] sm:$0x1] }
  0x91   :  { %78 = vst [vmem:[%s162_s1] sm:$0x1] %v75_v23 }

// kernel: tile.18
= control target key start
LH: loop header
LB: loop body
LE: loop exit
PB: predicated region body
PF: predicated region fallthrough
CT: control target
= control target key end

     0   :  { %s22_s0 = inlined_call_operand.vmem [shape: f32[20], index: 0, kind: input, shape index: {}]   ;;  %s23_s1 = inlined_call_operand.vmem [shape: f32[4,20], index: 1, kind: output, shape index: {}]  }
   0x1   :  { %v4_v0 = vld [vmem:[%s22_s0] ss:$0 sm:$0xff] }
   0x2   :  { %5 = vst [vmem:[%s23_s1] sm:$0xf] %v4_v0 }

// kernel: tile.19
= control target key start
LH: loop header
LB: loop body
LE: loop exit
PB: predicated region body
PF: predicated region fallthrough
CT: control target
= control target key end

     0   :  { %vm8_vm0 = vcmask 162816   ;;  %s40_s8 = smov 20   ;;  %s41_s9 = smov 40   ;;  %vm14_vm1 = vcmask 654816   ;;  %vm20_vm2 = vcmask 490816   ;;  %vm26_vm3 = vcmask 326816   ;;  %s58_s0 = inlined_call_operand.vmem [shape: f32[4,20], index: 0, kind: input, shape index: {}]   ;;  %s59_s1 = inlined_call_operand.vmem [shape: f32[80], index: 1, kind: output, shape index: {}]  }
   0x1   :  { %v5_v0 = vld [vmem:[%s58_s0] sm:$0xf]  ;;  %s39_s0 = smov 60  }
   0x2   :  { %6 = vst [vmem:[#allocation1] sm:$0xf] %v5_v0 }
   0x9   :  { %v11_v1 = vld [vmem:[#allocation1 + $0x3] sm:$0x1]   ;;  %v23_v2 = vld [vmem:[#allocation1 + $0x1] sm:$0x1]   ;;  %v7_v3 = vld [vmem:[#allocation1] sm:$0x1]  }
   0xa   :  { %12 = vrot.lane.b32.xlu0 %v11_v1, %s39_s0  ;;  %24 = vrot.lane.b32.xlu1 %v23_v2, %s40_s8  ;;  %v17_v4 = vld [vmem:[#allocation1 + $0x2] sm:$0x1]   ;;  %9 = vst.msk [vmem:[#allocation0] sm:$0x1] %vm8_vm0, %v7_v3  }
   0xe   :  { %18 = vrot.lane.b32.xlu0 %v17_v4, %s41_s9 }
  0x7c   :  { %v13_v5 = vpop.permute.xlu0 %12   ;;  %v25_v6 = vpop.permute.xlu1 %24  }
  0x7d   :  { %15 = vst.msk [vmem:[#allocation0] sm:$0x1] %vm14_vm1, %v13_v5  }
  0x80   :  { %v19_v7 = vpop.permute.xlu0 %18  }
  0x81   :  { %21 = vst.msk [vmem:[#allocation0] sm:$0x1] %vm20_vm2, %v19_v7  }
  0x82   :  { %27 = vst.msk [vmem:[#allocation0] sm:$0x1] %vm26_vm3, %v25_v6  }
  0x89   :  { %v32_v8 = vld [vmem:[#allocation0] sm:$0x1] }
  0x8a   :  { %35 = vst [vmem:[%s59_s1] sm:$0x1] %v32_v8 }

// kernel: net_forward.1
= control target key start
LH: loop header
LB: loop body
LE: loop exit
PB: predicated region body
PF: predicated region fallthrough
CT: control target
= control target key end

     0   :  { %14 = vsyncpa [#allocation3], 0  ;;  %s4172_s0 = inlined_call_operand.vmem [shape: bf16[2,28,32], index: 0, kind: input, shape index: {}]   ;;  %s4173_s1 = inlined_call_operand.vmem [shape: bf16[32,1280], index: 1, kind: input, shape index: {}]   ;;  %s4174_s2 = inlined_call_operand.vmem [shape: f32[1,128], index: 2, kind: input, shape index: {}]   ;;  %s4175_s3 = inlined_call_operand.vmem [shape: bf16[128,1280], index: 3, kind: input, shape index: {}]   ;;  %s4176_s4 = inlined_call_operand.vmem [shape: f32[1,128], index: 4, kind: input, shape index: {}]   ;;  %s4177_s5 = inlined_call_operand.vmem [shape: bf16[512,64], index: 5, kind: input, shape index: {}]   ;;  %s4178_s6 = inlined_call_operand.vmem [shape: f32[1,64], index: 6, kind: input, shape index: {}]   ;;  %s4179_s7 = inlined_call_operand.vmem [shape: bf16[64,128], index: 7, kind: input, shape index: {}]   ;;  %s4180_s8 = inlined_call_operand.vmem [shape: f32[1,128], index: 8, kind: input, shape index: {}]   ;;  %s4181_s9 = inlined_call_operand.hbm [shape: f32[2,1,128], index: 9, kind: output, shape index: {}]  }
   0x1   :  { %16 = vsyncpa [#allocation3 + $0x1], 0  ;;  %s3161_s30 = smov 0   ;;  %s3163_s10 = smov 0  }
   0x2   :  { %s3165_s11 = smov 0   ;;  %s3167_s12 = smov 0  }
   0x3 LB: > { %s3182_s13 = sadd.s32 4294967295, %s3105_s12   ;;  %s2521_s14 = sadd.s32 4294967294, %s3105_s12   ;;  %s3105_s12 = sphi %s3167_s12, %s4231_s12   ;;  %s3101_s11 = sphi %s3165_s11, %s4230_s11   ;;  %s3097_s10 = sphi %s3163_s10, %s4229_s10   ;;  %s3093_s30 = sphi %s3161_s30, %s4228_s30  }
   0x4   : > { %s3186_s15 = sadd.s32 1, %s3105_s12   ;;  %s223_s16 = sadd.s32 1, %s3101_s11 }
   0x5   : > { %s220_s17 = ssub.s32 %s3105_s12, %s3186_s15  ;;  %p233_p0 = scmp.ne.s32.totalorder %s3101_s11, %s3097_s10 }
   0x6   : > { %p221_p1 = scmp.eq.s32.totalorder %s220_s17, 0  ;;  %p234_p2 = scmp.eq.s32.totalorder %s3182_s13, 1 }
   0x7   : > { %p239_p3 = scmp.ne.s32.totalorder %s3097_s10, %s3093_s30  ;;  %p240_p4 = scmp.eq.s32.totalorder %s2521_s14, 1 }
   0x8   : > { %s3197_s18 = scalar_select %p221_p1, %s3101_s11, %s223_s16  }
   0x9   : > { %p3199_p5 = por %p234_p2, %p233_p0  ;;  %p3203_p6 = por %p240_p4, %p239_p3 }
   0xa   : > { %4197 = sst [smem:[#allocation5_spill]] %s3197_s18  ;;  %p2524_p7 = scmp.ge.s32.totalorder %s3105_s12, 1 }
   0xb   : > { %p290_p8 = scmp.lt.s32.totalorder %s3105_s12, 3 }
   0xd   : > { %p291_p9 = pnand %p2524_p7, %p290_p8 }
   0xf   : > { %294 = sbr.rel (%p291_p9) target bundleno = 1063 (0x427), region = 56 }
  0x14   : > { %v2857_v0 = vld [vmem:[%s4173_s1 + $0x54] ss:$40 sps:$4 sm:$0xff]   ;;  %p325_p10 = scmp.lt.s32.totalorder %s3182_s13, 1  ;;  %v4182_v2 = vmov 0   ;;  %v2861_v3 = vld [vmem:[%s4173_s1 + $0x50] ss:$40 sps:$4 sm:$0xff]  }
  0x15   : > { %v2859_v1 = vld [vmem:[%s4173_s1 + $0x5c] ss:$40 sps:$4 sm:$0xff]   ;;  %504 = vmatprep.mubr.bf16.mxu0 %v4182_v2  ;;  %557 = vmatprep.mubr.bf16.mxu1 %v4182_v2  ;;  %v2862_v4 = vld [vmem:[%s4173_s1 + $0x58] ss:$40 sps:$4 sm:$0xff]   ;;  %v2865_v6 = vld [vmem:[%s4173_s1 + $0xc] ss:$40 sps:$4 sm:$0xff]  }
  0x16   : > { %484 = vmatprep.subr.bf16.mxu0 %v2857_v0  ;;  %s326_s29 = scalar_select %p325_p10, %s3182_s13, 1  ;;  %537 = vmatprep.subr.bf16.mxu1 %v2859_v1  ;;  %v2863_v5 = vld [vmem:[%s4173_s1 + $0x4] ss:$40 sps:$4 sm:$0xff]   ;;  %v2867_v7 = vld [vmem:[%s4173_s1] ss:$40 sps:$4 sm:$0xff]   ;;  %vm465_vm0 = vcmask 261120  }
  0x17   : > { %485 = vmatpush1.bf16.msra.mxu0 %v2861_v3  ;;  %538 = vmatpush1.bf16.msra.mxu1 %v2862_v4  ;;  %v2868_v8 = vld [vmem:[%s4173_s1 + $0x8] ss:$40 sps:$4 sm:$0xff]   ;;  %v2872_v11 = vld [vmem:[%s4173_s1 + $0x64] ss:$40 sps:$4 sm:$0xff]   ;;  %v2879_v15 = vld [vmem:[%s4173_s1 + $0x14] ss:$40 sps:$4 sm:$0xff]  }
  0x18   : > { %s2681_s24 = sshll.u32 %s326_s29, 4  ;;  %486 = vmatprep.subr.bf16.mxu0 %v2863_v5  ;;  %539 = vmatprep.subr.bf16.mxu1 %v2865_v6  ;;  %v2870_v10 = vld [vmem:[%s4173_s1 + $0x60] ss:$40 sps:$4 sm:$0xff]   ;;  %v2875_v13 = vld [vmem:[%s4173_s1 + $0x6c] ss:$40 sps:$4 sm:$0xff]   ;;  %vm739_vm1 = vcmask 1040384  }
  0x19   : > { %s329_s14 = scalar_lea.vmem %s4172_s0, %s2681_s24  ;;  %v2873_v12 = vld [vmem:[%s4173_s1 + $0x68] ss:$40 sps:$4 sm:$0xff]   ;;  %v2880_v16 = vld [vmem:[%s4173_s1 + $0x18] ss:$40 sps:$4 sm:$0xff]   ;;  %v2882_v17 = vld [vmem:[%s4173_s1 + $0x1c] ss:$40 sps:$4 sm:$0xff]  }
  0x1a   : > { %v2869_v9 = vld [vmem:[%s329_s14] sm:$0xff]   ;;  %v2877_v14 = vld [vmem:[%s4173_s1 + $0x10] ss:$40 sps:$4 sm:$0xff]   ;;  %v2885_v18 = vld [vmem:[%s4173_s1 + $0x74] ss:$40 sps:$4 sm:$0xff]   ;;  %vm747_vm2 = vcmask 1041408  }
  0x1b   : > { %487 = vmatpush1.bf16.msra.mxu0 %v2867_v7  ;;  %540 = vmatpush1.bf16.msra.mxu1 %v2868_v8  ;;  %v2876_v19 = vld [vmem:[%s329_s14 + $0x8] sm:$0x3f]   ;;  %v2883_v20 = vld [vmem:[%s4173_s1 + $0x70] ss:$40 sps:$4 sm:$0xff]   ;;  %v3299_v23 = vld [vmem:[%s4175_s3 + $0x234] ss:$40 sps:$4 sm:$0xff]  }
  0x1c   : > { %590 = vmatprep.subr.bf16.mxu0 %v2872_v11  ;;  %643 = vmatprep.subr.bf16.mxu1 %v2875_v13  ;;  %v2888_v21 = vld [vmem:[%s4173_s1 + $0x24] ss:$40 sps:$4 sm:$0xff]   ;;  %v2886_v22 = vld [vmem:[%s4173_s1 + $0x20] ss:$40 sps:$4 sm:$0xff]   ;;  %v3309_v25 = vld [vmem:[%s4175_s3 + $0x230] ss:$40 sps:$4 sm:$0xff]  }
  0x1d   : > { %v3304_v24 = vld [vmem:[%s4175_s3 + $0x23c] ss:$40 sps:$4 sm:$0xff]   ;;  %v3314_v26 = vld [vmem:[%s4175_s3 + $0x238] ss:$40 sps:$4 sm:$0xff]   ;;  %v3328_v28 = vld [vmem:[%s4175_s3 + $0x1ec] ss:$40 sps:$4 sm:$0xff]  }
  0x1e   : > { %2549 = vmatmul.mubr.msk.bf16.vlgmr.msra.gmra.mxu0 %vm465_vm0, %v2869_v9  ;;  %2551 = vmatmul.mubr.msk.bf16.vlgmr.msra.gmra.mxu1 %vm465_vm0, %v2869_v9  ;;  %v3323_v27 = vld [vmem:[%s4175_s3 + $0x1e4] ss:$40 sps:$4 sm:$0xff]   ;;  %v3333_v29 = vld [vmem:[%s4175_s3 + $0x1e0] ss:$40 sps:$4 sm:$0xff]   ;;  %v3347_v31 = vld [vmem:[%s4175_s3 + $0x194] ss:$40 sps:$4 sm:$0xff]  }
  0x1f   : > { %591 = vmatpush1.bf16.msra.mxu0 %v2870_v10  ;;  %644 = vmatpush1.bf16.msra.mxu1 %v2873_v12  ;;  %v3338_v30 = vld [vmem:[%s4175_s3 + $0x1e8] ss:$40 sps:$4 sm:$0xff]   ;;  %v3352_v32 = vld [vmem:[%s4175_s3 + $0x19c] ss:$40 sps:$4 sm:$0xff]   ;;  %v3362_v34 = vld [vmem:[%s4175_s3 + $0x198] ss:$40 sps:$4 sm:$0xff]  }
  0x20   : > { %514 = vmatprep.mubr.bf16.mxu0 %v4182_v2  ;;  %567 = vmatprep.mubr.bf16.mxu1 %v4182_v2  ;;  %4200 = vst [vmem:[#allocation6_spill] sm:$0xff] %v3352_v32  ;;  %v3357_v33 = vld [vmem:[%s4175_s3 + $0x190] ss:$40 sps:$4 sm:$0xff]   ;;  %4201 = vst [vmem:[#allocation7_spill] sm:$0xff] %v3362_v34  ;;  %v3371_v35 = vld [vmem:[%s4175_s3 + $0x144] ss:$40 sps:$4 sm:$0xff]  }
  0x21   : > { %592 = vmatprep.subr.bf16.mxu0 %v2879_v15  ;;  %645 = vmatprep.subr.bf16.mxu1 %v2882_v17  ;;  %v3376_v36 = vld [vmem:[%s4175_s3 + $0x14c] ss:$40 sps:$4 sm:$0xff]   ;;  %v3381_v37 = vld [vmem:[%s4175_s3 + $0x140] ss:$40 sps:$4 sm:$0xff]   ;;  %v3400_v40 = vld [vmem:[%s4175_s3 + $0xfc] ss:$40 sps:$4 sm:$0xff]  }
  0x22   : > { %4202 = vst [vmem:[#allocation8_spill] sm:$0xff] %v3376_v36  ;;  %v3386_v38 = vld [vmem:[%s4175_s3 + $0x148] ss:$40 sps:$4 sm:$0xff]   ;;  %v3395_v39 = vld [vmem:[%s4175_s3 + $0xf4] ss:$40 sps:$4 sm:$0xff]   ;;  %4204 = vst [vmem:[#allocation10_spill] sm:$0xff] %v3400_v40 }
  0x23   : > { %593 = vmatpush1.bf16.msra.mxu0 %v2877_v14  ;;  %646 = vmatpush1.bf16.msra.mxu1 %v2880_v16  ;;  %4203 = vst [vmem:[#allocation9_spill] sm:$0xff] %v3386_v38  ;;  %v3405_v41 = vld [vmem:[%s4175_s3 + $0xf0] ss:$40 sps:$4 sm:$0xff]   ;;  %v3419_v43 = vld [vmem:[%s4175_s3 + $0xa4] ss:$40 sps:$4 sm:$0xff]   ;;  %vm922_vm3 = vcmask 1045504  }
  0x24   : > { %696 = vmatprep.subr.bf16.mxu0 %v2885_v18  ;;  %1460 = vmatprep.subr.bf16.mxu1 %v3299_v23  ;;  %v3410_v42 = vld [vmem:[%s4175_s3 + $0xf8] ss:$40 sps:$4 sm:$0xff]   ;;  %v3424_v44 = vld [vmem:[%s4175_s3 + $0xac] ss:$40 sps:$4 sm:$0xff]   ;;  %v3434_v46 = vld [vmem:[%s4175_s3 + $0xa8] ss:$40 sps:$4 sm:$0xff]  }
  0x25   : > { %4205 = vst [vmem:[#allocation11_spill] sm:$0xff] %v3410_v42  ;;  %4206 = vst [vmem:[#allocation12_spill] sm:$0xff] %v3424_v44  ;;  %v3429_v45 = vld [vmem:[%s4175_s3 + $0xa0] ss:$40 sps:$4 sm:$0xff]   ;;  %v3443_v47 = vld [vmem:[%s4175_s3 + $0x54] ss:$40 sps:$4 sm:$0xff]  }
  0x26   : > { %2550 = vmatmul.mubr.msk.bf16.gmra.mxu0 %vm465_vm0, %v2876_v19  ;;  %2552 = vmatmul.mubr.msk.bf16.gmra.mxu1 %vm465_vm0, %v2876_v19  ;;  %4207 = vst [vmem:[#allocation13_spill] sm:$0xff] %v3434_v46  ;;  %v3448_v48 = vld [vmem:[%s4175_s3 + $0x5c] ss:$40 sps:$4 sm:$0xff]   ;;  %v3453_v49 = vld [vmem:[%s4175_s3 + $0x50] ss:$40 sps:$4 sm:$0xff]   ;;  %vm755_vm4 = vcmask 1042432  }
  0x27   : > { %610 = vmatprep.mubr.bf16.mxu0 %v4182_v2  ;;  %663 = vmatprep.mubr.bf16.mxu1 %v4182_v2  ;;  %4208 = vst [vmem:[#allocation14_spill] sm:$0xff] %v3448_v48  ;;  %v3458_v50 = vld [vmem:[%s4175_s3 + $0x58] ss:$40 sps:$4 sm:$0xff]   ;;  %v3467_v51 = vld [vmem:[%s4175_s3 + $0x4] ss:$40 sps:$4 sm:$0xff]   ;;  %vm881_vm5 = vcmask 1046528  }
  0x28   : > { %4209 = vst [vmem:[#allocation15_spill] sm:$0xff] %v3458_v50  ;;  %v3472_v52 = vld [vmem:[%s4175_s3 + $0xc] ss:$40 sps:$4 sm:$0xff]   ;;  %v3477_v53 = vld [vmem:[%s4175_s3] ss:$40 sps:$4 sm:$0xff]   ;;  %vm3109_vm6 = vmmov 0  }
  0x29   : > { %4210 = vst [vmem:[#allocation16_spill] sm:$0xff] %v3472_v52  ;;  %v3482_v54 = vld [vmem:[%s4175_s3 + $0x8] ss:$40 sps:$4 sm:$0xff]   ;;  %v3491_v55 = vld [vmem:[%s4175_s3 + $0x244] ss:$40 sps:$4 sm:$0xff]   ;;  %vm2408_vm7 = vcmask 523264  }
  0x2a   : > { %4211 = vst [vmem:[#allocation17_spill] sm:$0xff] %v3482_v54  ;;  %v3496_v56 = vld [vmem:[%s4175_s3 + $0x24c] ss:$40 sps:$4 sm:$0xff]   ;;  %s323_s21 = sand.u32 1, %s3097_s10   ;;  %s2678_s23 = sshll.u32 %s3182_s13, 4 }
  0x2b   : > { %4212 = vst [vmem:[#allocation18_spill] sm:$0xff] %v3496_v56  ;;  %s324_s25 = scalar_lea.vmem [#allocation2], %s323_s21  ;;  %s4131_s26 = scalar_lea.hbm %s4181_s9, %s2678_s23 }
  0x2c   : > { %s2466_s24 = sshll.u32 %s324_s25, 4  ;;  %s2454_s27 = scalar_lea.sflag [#allocation3], %s323_s21  ;;  %s4133_s24 = int_to_ptr.vmem [resolvable:$true] %s2466_s24 }
  0x2d   : > { %s3045_s28 = scalar_lea.vmem %s4133_s24, 16  ;;  %s3110_s13 = smov [#allocation2]  }
  0x2e   : > { %2553 = vmatmul.mubr.msk.bf16.vlgmr.msra.gmra.mxu0 %vm465_vm0, %v2869_v9  ;;  %2555 = vmatmul.mubr.msk.bf16.vlgmr.msra.gmra.mxu1 %vm465_vm0, %v2869_v9  ;;  %p3046_p11 = scmp.ne.s32.totalorder %s4133_s24, %s3045_s28  ;;  %s3049_s16 = sshll.u32 %s3110_s13, 4  ;;  %s3050_s16 = int_to_ptr.vmem [resolvable:$false] %s3049_s16 }
  0x2f   : > { %697 = vmatpush1.bf16.msra.mxu0 %v2883_v20  ;;  %620 = vmatprep.mubr.bf16.mxu0 %v4182_v2  ;;  %s3051_s17 = scalar_lea.vmem %s3050_s16, 32  ;;  %p3052_p0 = scmp.lt.s32.totalorder %s4133_s24, %s3050_s16 }
  0x30   : > { %673 = vmatprep.mubr.bf16.mxu1 %v4182_v2  ;;  %698 = vmatprep.subr.bf16.mxu0 %v2888_v21  ;;  %p3047_p12 = pnand %p3046_p11, %p3199_p5  ;;  %p3053_p1 = scmp.lt.s32.totalorder %s3051_s17, %s3045_s28 }
  0x31   : > { %1461 = vmatpush1.bf16.msra.mxu1 %v3309_v25 }
  0x32   : > { %1462 = vmatprep.subr.bf16.mxu1 %v3323_v27  ;;  %p3048_p13 = pneg %p3047_p12  ;;  %p3054_p2 = por %p3053_p1, %p3052_p0 }
  0x33   : > { %699 = vmatpush1.bf16.msra.mxu0 %v2886_v22 }
  0x34   : > { %1501 = vmatprep.subr.bf16.mxu0 %v3304_v24  ;;  %p3055_p3 = pnand %p3054_p2, %p3048_p13 }
  0x35   : > { %1463 = vmatpush1.bf16.msra.mxu1 %v3333_v29 }
  0x36   : > { %2554 = vmatmul.mubr.msk.bf16.gmra.mxu0 %vm465_vm0, %v2876_v19  ;;  %2556 = vmatmul.mubr.msk.bf16.gmra.mxu1 %vm465_vm0, %v2876_v19 }
  0x37   : > { %716 = vmatprep.mubr.bf16.mxu0 %v4182_v2  ;;  %1492 = vmatprep.mubr.bf16.mxu1 %v4182_v2 }
  0x38   : > { %1464 = vmatprep.subr.bf16.mxu1 %v3347_v31 }
  0x39   : > { %1465 = vmatpush1.bf16.msra.mxu1 %v3357_v33 }
  0x3a   : > { %1466 = vmatprep.subr.bf16.mxu1 %v3371_v35 }
  0x3d   : > { %1467 = vmatpush1.bf16.msra.mxu1 %v3381_v37 }
  0x3e   : > { %2557 = vmatmul.mubr.msk.bf16.vlgmr.msra.gmra.mxu0 %vm465_vm0, %v2869_v9  ;;  %1468 = vmatprep.subr.bf16.mxu1 %v3395_v39 }
  0x3f   : > { %726 = vmatprep.mubr.bf16.mxu0 %v4182_v2  ;;  %1502 = vmatpush1.bf16.msra.mxu0 %v3314_v26 }
  0x40   : > { %1503 = vmatprep.subr.bf16.mxu0 %v3328_v28 }
  0x41   : > { %1469 = vmatpush1.bf16.msra.mxu1 %v3405_v41 }
  0x42   : > { %1470 = vmatprep.subr.bf16.mxu1 %v3419_v43 }
  0x43   : > { %1504 = vmatpush1.bf16.msra.mxu0 %v3338_v30 }
  0x44   : > { %1505 = vmatprep.subr.bf16.mxu0 %v3352_v32 }
  0x45   : > { %1471 = vmatpush1.bf16.msra.mxu1 %v3429_v45 }
  0x46   : > { %2558 = vmatmul.mubr.msk.bf16.gmra.mxu0 %vm465_vm0, %v2876_v19  ;;  %1472 = vmatprep.subr.bf16.mxu1 %v3443_v47 }
  0x47   : > { %1533 = vmatprep.mubr.bf16.mxu0 %v4182_v2  ;;  %1506 = vmatpush1.bf16.msra.mxu0 %v3362_v34 }
  0x48   : > { %1507 = vmatprep.subr.bf16.mxu0 %v3376_v36 }
  0x49   : > { %1473 = vmatpush1.bf16.msra.mxu1 %v3453_v49 }
  0x4a   : > { %1474 = vmatprep.subr.bf16.mxu1 %v3467_v51 }
  0x4b   : > { %1508 = vmatpush1.bf16.msra.mxu0 %v3386_v38 }
  0x4c   : > { %1509 = vmatprep.subr.bf16.mxu0 %v3400_v40 }
  0x4d   : > { %1475 = vmatpush1.bf16.msra.mxu1 %v3477_v53 }
  0x4e   : > { %1542 = vmatprep.subr.bf16.mxu1 %v3491_v55 }
  0x4f   : > { %1510 = vmatpush1.bf16.msra.mxu0 %v3410_v42 }
  0x50   : > { %1511 = vmatprep.subr.bf16.mxu0 %v3424_v44 }
  0x53   : > { %1512 = vmatpush1.bf16.msra.mxu0 %v3434_v46 }
  0x54   : > { %1513 = vmatprep.subr.bf16.mxu0 %v3448_v48 }
  0x57   : > { %1514 = vmatpush1.bf16.msra.mxu0 %v3458_v50 }
  0x58   : > { %1515 = vmatprep.subr.bf16.mxu0 %v3472_v52 }
  0x5b   : > { %1516 = vmatpush1.bf16.msra.mxu0 %v3482_v54 }
  0x5c   : > { %1583 = vmatprep.subr.bf16.mxu0 %v3496_v56 }
  0xde   : > { %v3500_v57 = vpop.f32.mrf.mxu0  ;;  %v559_v58 = vpop.f32.mrf.mxu1 }
  0xdf   : > { %v914_v1 = vrot.slane %v559_v58, 4  ;;  %v740_v56 = vrot.slane %v559_v58, 7 }
  0xe0   : > { %v3502_v59 = vpop.f32.mrf.mxu0  ;;  %v561_v60 = vpop.f32.mrf.mxu1 }
  0xe1   : > { %v945_v5 = vrot.slane %v561_v60, 4 }
  0xe2   : > { %v3504_v61 = vpop.f32.mrf.mxu0  ;;  %v563_v62 = vpop.f32.mrf.mxu1 }
  0xe3   : > { %v741_v54 = vrot.slane %v563_v62, 7 }
  0xe4   : > { %v3506_v63 = vpop.f32.mrf.mxu0  ;;  %v565_v0 = vpop.f32.mrf.mxu1 }
  0xe5   : > { %v3513_v48 = vrot.slane %v565_v0, 7  ;;  %v742_v58 = vsel %vm739_vm1, %v740_v56, %v741_v54 }
  0xe6   : > { %v516_v3 = vpop.f32.mrf.mxu0  ;;  %v569_v4 = vpop.f32.mrf.mxu1  ;;  %v744_v44 = vadd.f32 %v742_v58, %v3500_v57 }
  0xe7   : > { %v916_v6 = vadd.f32 %v914_v1, %v516_v3  ;;  %v792_v7 = vrot.slane %v569_v4, 7 }
  0xe8   : > { %v518_v8 = vpop.f32.mrf.mxu0  ;;  %v571_v9 = vpop.f32.mrf.mxu1 }
  0xe9   : > { %v947_v10 = vadd.f32 %v945_v5, %v518_v8  ;;  %v868_v11 = vadd.f32 %v792_v7, %v3504_v61  ;;  %v823_v18 = vrot.slane %v571_v9, 7 }
  0xea   : > { %v520_v12 = vpop.f32.mrf.mxu0  ;;  %v573_v13 = vpop.f32.mrf.mxu1 }
  0xeb   : > { %v917_v14 = vadd.f32 %v914_v1, %v520_v12  ;;  %v864_v15 = vrot.slane %v573_v13, 7 }
  0xec   : > { %v522_v16 = vpop.f32.mrf.mxu0  ;;  %v575_v17 = vpop.f32.mrf.mxu1 }
  0xed   : > { %v865_v19 = vsel %vm739_vm1, %v792_v7, %v864_v15  ;;  %v948_v20 = vadd.f32 %v945_v5, %v522_v16  ;;  %v889_v21 = vrot.slane %v575_v17, 7  ;;  %v893_v5 = vadd.f32 %v823_v18, %v3506_v63 }
  0xee   : > { %v612_v22 = vpop.f32.mrf.mxu0  ;;  %v869_v2 = vadd.f32 %v865_v19, %v516_v3  ;;  %v3510_v4 = vpop.f32.mrf.mxu1  ;;  %v767_v16 = vrot.slane %v561_v60, 7  ;;  %v793_v60 = vsel %vm739_vm1, %v741_v54, %v792_v7 }
  0xef   : > { %v890_v52 = vsel %vm739_vm1, %v823_v18, %v889_v21  ;;  %v871_v50 = vrot.slane %v612_v22, 3  ;;  %v796_v21 = vadd.f32 %v741_v54, %v3500_v57  ;;  %v797_v36 = vadd.f32 %v793_v60, %v3504_v61 }
  0xf0   : > { %v614_v1 = vpop.f32.mrf.mxu0  ;;  %v894_v12 = vadd.f32 %v890_v52, %v518_v8  ;;  %v3515_v13 = vpop.f32.mrf.mxu1  ;;  %v769_v52 = vsel %vm739_vm1, %v767_v16, %v3513_v48 }
  0xf1   : > { %v873_v9 = vadd.f32 %v871_v50, %v868_v11  ;;  %v874_v46 = vadd.f32 %v871_v50, %v869_v2  ;;  %v896_v15 = vrot.slane %v614_v1, 3  ;;  %v771_v16 = vadd.f32 %v769_v52, %v3502_v59 }
  0xf2   : > { %v616_v3 = vpop.f32.mrf.mxu0  ;;  %v669_v17 = vpop.f32.mrf.mxu1 }
  0xf3   : > { %v898_v62 = vadd.f32 %v896_v15, %v893_v5  ;;  %v899_v19 = vadd.f32 %v896_v15, %v894_v12  ;;  %v918_v0 = vrot.slane %v616_v3, 3  ;;  %v876_v8 = vrot.slane %v669_v17, 2 }
  0xf4   : > { %v618_v2 = vpop.f32.mrf.mxu0  ;;  %v671_v50 = vpop.f32.mrf.mxu1 }
  0xf5   : > { %v920_v11 = vadd.f32 %v918_v0, %v916_v6  ;;  %v921_v22 = vadd.f32 %v918_v0, %v917_v14  ;;  %v949_v1 = vrot.slane %v618_v2, 3  ;;  %v3524_v56 = vadd.f32 %v876_v8, %v873_v9 }
  0xf6   : > { %v3526_v12 = vadd.f32 %v876_v8, %v874_v46  ;;  %v901_v5 = vrot.slane %v671_v50, 2  ;;  %v622_v15 = vpop.f32.mrf.mxu0  ;;  %v675_v42 = vpop.f32.mrf.mxu1  ;;  %v824_v46 = vsel %vm739_vm1, %v3513_v48, %v823_v18  ;;  %v748_v9 = vrot.slane %v616_v3, 6 }
  0xf7   : > { %v951_v17 = vadd.f32 %v949_v1, %v947_v10  ;;  %v952_v40 = vadd.f32 %v949_v1, %v948_v20  ;;  %v749_v38 = vrot.slane %v622_v15, 6  ;;  %v923_v7 = vrot.slane %v675_v42, 2 }
  0xf8   : > { %v3530_v54 = vadd.f32 %v901_v5, %v898_v62  ;;  %v3532_v6 = vadd.f32 %v901_v5, %v899_v19  ;;  %v624_v57 = vpop.f32.mrf.mxu0  ;;  %v677_v14 = vpop.f32.mrf.mxu1  ;;  %v774_v58 = vrot.slane %v618_v2, 6  ;;  %v756_v50 = vrot.slane %v675_v42, 5 }
  0xf9   : > { %v775_v0 = vrot.slane %v624_v57, 6  ;;  %v924_v10 = vsel %vm922_vm3, %v876_v8, %v923_v7  ;;  %v3537_v20 = vadd.f32 %v923_v7, %v921_v22  ;;  %v953_v52 = vrot.slane %v677_v14, 2 }
  0xfa   : > { %v626_v61 = vpop.f32.mrf.mxu0  ;;  %v679_v62 = vpop.f32.mrf.mxu1  ;;  %v750_v19 = vsel %vm747_vm2, %v748_v9, %v749_v38  ;;  %v3540_v60 = vadd.f32 %v924_v10, %v920_v11  ;;  %v781_v34 = vrot.slane %v677_v14, 5  ;;  %v827_v11 = vadd.f32 %v3513_v48, %v3502_v59 }
  0xfb   : > { %v776_v1 = vsel %vm747_vm2, %v774_v58, %v775_v0  ;;  %v799_v15 = vrot.slane %v626_v61, 6  ;;  %v954_v18 = vsel %vm922_vm3, %v901_v5, %v953_v52  ;;  %v3544_v3 = vadd.f32 %v953_v52, %v952_v40 }
  0xfc   : > { %v757_v42 = vrot.slane %v679_v62, 5  ;;  %v628_v2 = vpop.f32.mrf.mxu0  ;;  %v681_v8 = vpop.f32.mrf.mxu1  ;;  %v3546_v22 = vadd.f32 %v954_v18, %v951_v17  ;;  %v828_v9 = vadd.f32 %v824_v46, %v3506_v63  ;;  %v803_v58 = vadd.f32 %v796_v21, %v749_v38 }
  0xfd   : > { %v800_v7 = vsel %vm747_vm2, %v749_v38, %v799_v15  ;;  %v830_v57 = vrot.slane %v628_v2, 6  ;;  %v782_v32 = vrot.slane %v681_v8, 5  ;;  %v778_v14 = vadd.f32 %v776_v1, %v771_v16 }
  0xfe   : > { %v718_v10 = vpop.f32.mrf.mxu0  ;;  %v804_v5 = vadd.f32 %v800_v7, %v797_v36  ;;  %v758_v40 = vsel %vm755_vm4, %v756_v50, %v757_v42  ;;  %v752_v61 = vadd.f32 %v750_v19, %v744_v44  ;;  %v834_v62 = vadd.f32 %v827_v11, %v775_v0 }
  0xff   : > { %v831_v52 = vsel %vm747_vm2, %v775_v0, %v830_v57  ;;  %v783_v17 = vsel %vm755_vm4, %v781_v34, %v782_v32  ;;  %v806_v2 = vrot.slane %v3510_v4, 2  ;;  %v837_v59 = vrot.slane %v3515_v13, 2 }
 0x100   : > { %v720_v15 = vpop.f32.mrf.mxu0  ;;  %v785_v18 = vadd.f32 %v783_v17, %v778_v14  ;;  %v835_v8 = vadd.f32 %v831_v52, %v828_v9  ;;  %v760_v38 = vadd.f32 %v758_v40, %v752_v61  ;;  %v762_v63 = vrot.slane %v718_v10, 1 }
 0x101   : > { %v787_v48 = vrot.slane %v720_v15, 1  ;;  %v808_v36 = vadd.f32 %v806_v2, %v803_v58  ;;  %v809_v16 = vadd.f32 %v806_v2, %v804_v5  ;;  %v839_v42 = vadd.f32 %v837_v59, %v834_v62 }
 0x102   : > { %v722_v21 = vpop.f32.mrf.mxu0  ;;  %v840_v44 = vadd.f32 %v837_v59, %v835_v8  ;;  %v764_v19 = vadd.f32 %v762_v63, %v760_v38 }
 0x103   : > { %v811_v46 = vrot.slane %v722_v21, 1  ;;  %v789_v50 = vadd.f32 %v787_v48, %v785_v18  ;;  %v2559_v48 = vld [vmem:[%s4174_s2] ss:$0 sm:$0xff] }
 0x104   : > { %v724_v1 = vpop.f32.mrf.mxu0 }
 0x105   : > { %v813_v32 = vadd.f32 %v811_v46, %v808_v36  ;;  %v814_v34 = vadd.f32 %v811_v46, %v809_v16  ;;  %v842_v0 = vrot.slane %v724_v1, 1  ;;  %v790_v9 = vmax.f32 %v764_v19, %v789_v50 }
 0x106   : > { %v728_v7 = vpop.f32.mrf.mxu0 }
 0x107   : > { %v817_v4 = vrot.slane %v813_v32, 7  ;;  %v818_v57 = vrot.slane %v814_v34, 7  ;;  %v844_v11 = vadd.f32 %v842_v0, %v839_v42  ;;  %v845_v13 = vadd.f32 %v842_v0, %v840_v44 }
 0x108   : > { %v882_v14 = vrot.slane %v728_v7, 1  ;;  %v730_v10 = vpop.f32.mrf.mxu0  ;;  %v3577_v7 = vld [vmem:[%s4175_s3 + $0x240] ss:$40 sps:$4 sm:$0xff]  }
 0x109   : > { %v819_v58 = vsel %vm739_vm1, %v817_v4, %v818_v57  ;;  %v848_v5 = vrot.slane %v844_v11, 7  ;;  %v849_v40 = vrot.slane %v845_v13, 7  ;;  %v906_v52 = vrot.slane %v730_v10, 1  ;;  %v3605_v10 = vld [vmem:[%s4175_s3 + $0x1f0] ss:$40 sps:$4 sm:$0xff]  }
 0x10a   : > { %v821_v17 = vmax.f32 %v790_v9, %v819_v58  ;;  %v883_v61 = vsel %vm881_vm5, %v811_v46, %v882_v14  ;;  %v732_v62 = vpop.f32.mrf.mxu0  ;;  %v887_v18 = vadd.f32 %v882_v14, %v3526_v12  ;;  %v3610_v58 = vld [vmem:[%s4175_s3 + $0x1f8] ss:$40 sps:$4 sm:$0xff]  }
 0x10b   : > { %v850_v15 = vsel %vm739_vm1, %v848_v5, %v849_v40  ;;  %v907_v2 = vsel %vm881_vm5, %v842_v0, %v906_v52  ;;  %v911_v8 = vadd.f32 %v906_v52, %v3532_v6  ;;  %v886_v38 = vadd.f32 %v883_v61, %v3524_v56  ;;  %v3617_v40 = vld [vmem:[%s4175_s3 + $0x1a4] ss:$40 sps:$4 sm:$0xff]  }
 0x10c   : > { %v852_v59 = vmax.f32 %v821_v17, %v850_v15  ;;  %v910_v63 = vadd.f32 %v907_v2, %v3530_v54  ;;  %v930_v21 = vrot.slane %v732_v62, 1  ;;  %v734_v36 = vpop.f32.mrf.mxu0  ;;  %v4213_v61 = vmov 0   ;;  %v3636_v2 = vld [vmem:[%s4175_s3 + $0x1a8] ss:$40 sps:$4 sm:$0xff]  }
 0x10d   : > { %v913_v16 = vmax.f32 %v887_v18, %v911_v8  ;;  %v960_v46 = vrot.slane %v734_v36, 1  ;;  %v3631_v18 = vld [vmem:[%s4175_s3 + $0x1a0] ss:$40 sps:$4 sm:$0xff]   ;;  %v3669_v36 = vld [vmem:[%s4175_s3 + $0x104] ss:$40 sps:$4 sm:$0xff]  }
 0x10e   : > { %v912_v50 = vmax.f32 %v886_v38, %v910_v63  ;;  %v931_v12 = vsel %vm881_vm5, %v882_v14, %v930_v21  ;;  %v935_v1 = vadd.f32 %v930_v21, %v3537_v20  ;;  %v860_v42 = vadd.f32 %v2559_v48, %v852_v59  ;;  %v3582_v20 = vld [vmem:[%s4175_s3 + $0x248] ss:$40 sps:$4 sm:$0xff]   ;;  %v3648_v59 = vld [vmem:[%s4175_s3 + $0x15c] ss:$40 sps:$4 sm:$0xff]   ;;  %v3662_v21 = vld [vmem:[%s4175_s3 + $0x158] ss:$40 sps:$4 sm:$0xff]  }
 0x10f   : > { %v934_v6 = vadd.f32 %v931_v12, %v3540_v60  ;;  %v961_v32 = vsel %vm881_vm5, %v906_v52, %v960_v46  ;;  %v965_v34 = vadd.f32 %v960_v46, %v3544_v3  ;;  %v3589_v3 = vld [vmem:[%s4175_s3 + $0x1f4] ss:$40 sps:$4 sm:$0xff]   ;;  %v3657_v63 = vld [vmem:[%s4175_s3 + $0x150] ss:$40 sps:$4 sm:$0xff]   ;;  %v3681_v46 = vld [vmem:[%s4175_s3 + $0x100] ss:$40 sps:$4 sm:$0xff]  }
 0x110   : > { %v939_v44 = vrot.slane %v935_v1, 7  ;;  %v964_v56 = vadd.f32 %v961_v32, %v3546_v22  ;;  %v861_v54 = vmax.f32 %v860_v42, 0.0  ;;  %v3594_v22 = vld [vmem:[%s4175_s3 + $0x1fc] ss:$40 sps:$4 sm:$0xff]   ;;  %v3622_v52 = vld [vmem:[%s4175_s3 + $0x1ac] ss:$40 sps:$4 sm:$0xff]  }
 0x111   : > { %v938_v0 = vrot.slane %v934_v6, 7  ;;  %v969_v19 = vrot.slane %v965_v34, 7  ;;  %v3693_v12 = vld [vmem:[%s4175_s3 + $0xb4] ss:$40 sps:$4 sm:$0xff]   ;;  %v3705_v42 = vld [vmem:[%s4175_s3 + $0xb0] ss:$40 sps:$4 sm:$0xff]  }
 0x112   : > { %v968_v60 = vrot.slane %v964_v56, 7  ;;  %v3584_v4 = vpack.c.bf16 %v861_v54, %v861_v54  ;;  %v3698_v1 = vld [vmem:[%s4175_s3 + $0xbc] ss:$40 sps:$4 sm:$0xff]   ;;  %v3710_v6 = vld [vmem:[%s4175_s3 + $0xb8] ss:$40 sps:$4 sm:$0xff]  }
 0x113   : > { %v940_v57 = vsel %vm739_vm1, %v938_v0, %v939_v44  ;;  %v943_v11 = vmax.f32 %v912_v50, %v938_v0  ;;  %v3686_v50 = vld [vmem:[%s4175_s3 + $0x108] ss:$40 sps:$4 sm:$0xff]   ;;  %v3717_v32 = vld [vmem:[%s4175_s3 + $0x64] ss:$40 sps:$4 sm:$0xff]   ;;  %v3741_v54 = vld [vmem:[%s4175_s3 + $0x14] ss:$40 sps:$4 sm:$0xff]  }
 0x114   : > { %v944_v13 = vmax.f32 %v913_v16, %v940_v57  ;;  %v970_v9 = vsel %vm739_vm1, %v968_v60, %v969_v19  ;;  %1493 = vmatmul.mubr.bf16.vlgmr.msra.gmra.mxu1 %v3584_v4  ;;  %1534 = vmatmul.mubr.bf16.vlgmr.msra.gmra.mxu0 %v3584_v4  ;;  %v3674_v16 = vld [vmem:[%s4175_s3 + $0x10c] ss:$40 sps:$4 sm:$0xff]   ;;  %v3729_v44 = vld [vmem:[%s4175_s3 + $0x60] ss:$40 sps:$4 sm:$0xff]   ;;  %v3746_v0 = vld [vmem:[%s4175_s3 + $0x1c] ss:$40 sps:$4 sm:$0xff]  }
 0x115   : > { %v973_v14 = vmax.f32 %v943_v11, %v968_v60  ;;  %1543 = vmatpush1.bf16.msra.mxu1 %v3577_v7  ;;  %1584 = vmatpush1.bf16.msra.mxu0 %v3582_v20  ;;  %v3722_v34 = vld [vmem:[%s4175_s3 + $0x6c] ss:$40 sps:$4 sm:$0xff]   ;;  %v3734_v56 = vld [vmem:[%s4175_s3 + $0x68] ss:$40 sps:$4 sm:$0xff]   ;;  %v3758_v60 = vld [vmem:[%s4175_s3 + $0x18] ss:$40 sps:$4 sm:$0xff]  }
 0x116   : > { %v974_v5 = vmax.f32 %v944_v13, %v970_v9  ;;  %1544 = vmatprep.subr.bf16.mxu1 %v3589_v3  ;;  %1585 = vmatprep.subr.bf16.mxu0 %v3594_v22  ;;  %v3753_v19 = vld [vmem:[%s4175_s3 + $0x10] ss:$40 sps:$4 sm:$0xff]   ;;  %v3765_v57 = vld [vmem:[%s4175_s3 + $0x254] ss:$40 sps:$4 sm:$0xff]   ;;  %v3779_v13 = vld [vmem:[%s4175_s3 + $0x204] ss:$40 sps:$4 sm:$0xff]  }
 0x117   : > { %v975_v17 = vadd.f32 %v2559_v48, %v973_v14  ;;  %1574 = vmatprep.mubr.bf16.mxu1 %v4213_v61  ;;  %1615 = vmatprep.mubr.bf16.mxu0 %v4213_v61  ;;  %v3772_v11 = vld [vmem:[%s4175_s3 + $0x250] ss:$40 sps:$4 sm:$0xff]   ;;  %v3788_v9 = vld [vmem:[%s4175_s3 + $0x200] ss:$40 sps:$4 sm:$0xff]  }
 0x118   : > { %v976_v62 = vadd.f32 %v2559_v48, %v974_v5  ;;  %v3643_v48 = vld [vmem:[%s4175_s3 + $0x154] ss:$40 sps:$4 sm:$0xff]  }
 0x119   : > { %v977_v15 = vmax.f32 %v975_v17, 0.0  ;;  %1545 = vmatpush1.bf16.msra.mxu1 %v3605_v10  ;;  %1586 = vmatpush1.bf16.msra.mxu0 %v3610_v58  ;;  %v4225_v14 = vld [vmem:[#allocation17_spill] sm:$0xff]  ;;  %v3011_v5 = vld [vmem:[%s4177_s5 + $0x30] sm:$0xff]   ;;  %v3014_v17 = vld [vmem:[%s4177_s5 + $0x68] sm:$0xff]  }
 0x11a   : > { %v978_v8 = vmax.f32 %v976_v62, 0.0  ;;  %1546 = vmatprep.subr.bf16.mxu1 %v3617_v40  ;;  %1587 = vmatprep.subr.bf16.mxu0 %v3622_v52 }
 0x11c   : > { %v3650_v38 = vpack.c.bf16 %v978_v8, %v977_v15  ;;  %v3015_v15 = vld [vmem:[%s4177_s5 + $0x20] sm:$0xff]  }
 0x11d   : > { %1547 = vmatpush1.bf16.msra.mxu1 %v3631_v18  ;;  %1588 = vmatpush1.bf16.msra.mxu0 %v3636_v2  ;;  %v3016_v8 = vld [vmem:[%s4177_s5 + $0x60] sm:$0xff]  }
 0x11e   : > { %1548 = vmatprep.subr.bf16.mxu1 %v3643_v48  ;;  %1589 = vmatprep.subr.bf16.mxu0 %v3648_v59 }
 0x121   : > { %1549 = vmatpush1.bf16.msra.mxu1 %v3657_v63  ;;  %1590 = vmatpush1.bf16.msra.mxu0 %v3662_v21 }
 0x122   : > { %1550 = vmatprep.subr.bf16.mxu1 %v3669_v36  ;;  %1591 = vmatprep.subr.bf16.mxu0 %v3674_v16 }
 0x125   : > { %1551 = vmatpush1.bf16.msra.mxu1 %v3681_v46  ;;  %1592 = vmatpush1.bf16.msra.mxu0 %v3686_v50 }
 0x126   : > { %1552 = vmatprep.subr.bf16.mxu1 %v3693_v12  ;;  %1593 = vmatprep.subr.bf16.mxu0 %v3698_v1 }
 0x129   : > { %1553 = vmatpush1.bf16.msra.mxu1 %v3705_v42  ;;  %1594 = vmatpush1.bf16.msra.mxu0 %v3710_v6 }
 0x12a   : > { %1554 = vmatprep.subr.bf16.mxu1 %v3717_v32  ;;  %1595 = vmatprep.subr.bf16.mxu0 %v3722_v34 }
 0x12d   : > { %1555 = vmatpush1.bf16.msra.mxu1 %v3729_v44  ;;  %1596 = vmatpush1.bf16.msra.mxu0 %v3734_v56 }
 0x12e   : > { %1556 = vmatprep.subr.bf16.mxu1 %v3741_v54  ;;  %1597 = vmatprep.subr.bf16.mxu0 %v3746_v0 }
 0x131   : > { %1557 = vmatpush1.bf16.msra.mxu1 %v3753_v19  ;;  %1598 = vmatpush1.bf16.msra.mxu0 %v3758_v60 }
 0x132   : > { %1624 = vmatprep.subr.bf16.mxu1 %v3765_v57  ;;  %1668 = vmatprep.subr.bf16.mxu0 %v3299_v23  ;;  %v3795_v23 = vld [vmem:[%s4175_s3 + $0x1b4] ss:$40 sps:$4 sm:$0xff]  }
 0x134   : > { %1575 = vmatmul.mubr.bf16.vlgmr.msra.gmra.mxu1 %v3584_v4  ;;  %1616 = vmatmul.mubr.bf16.vlgmr.msra.gmra.mxu0 %v3584_v4 }
 0x135   : > { %1625 = vmatpush1.bf16.msra.mxu1 %v3772_v11  ;;  %1669 = vmatpush1.bf16.msra.mxu0 %v3309_v25  ;;  %v3804_v25 = vld [vmem:[%s4175_s3 + $0x1b0] ss:$40 sps:$4 sm:$0xff]  }
 0x136   : > { %1626 = vmatprep.subr.bf16.mxu1 %v3779_v13  ;;  %1670 = vmatprep.subr.bf16.mxu0 %v3323_v27  ;;  %v3811_v27 = vld [vmem:[%s4175_s3 + $0x164] ss:$40 sps:$4 sm:$0xff]  }
 0x137   : > { %1656 = vmatprep.mubr.bf16.mxu1 %v4213_v61  ;;  %1700 = vmatprep.mubr.bf16.mxu0 %v4213_v61 }
 0x139   : > { %1627 = vmatpush1.bf16.msra.mxu1 %v3788_v9  ;;  %1671 = vmatpush1.bf16.msra.mxu0 %v3333_v29  ;;  %v3818_v29 = vld [vmem:[%s4175_s3 + $0x160] ss:$40 sps:$4 sm:$0xff]  }
 0x13a   : > { %1628 = vmatprep.subr.bf16.mxu1 %v3795_v23  ;;  %1672 = vmatprep.subr.bf16.mxu0 %v3347_v31  ;;  %v3825_v31 = vld [vmem:[%s4175_s3 + $0x114] ss:$40 sps:$4 sm:$0xff]  }
 0x13d   : > { %1629 = vmatpush1.bf16.msra.mxu1 %v3804_v25  ;;  %1673 = vmatpush1.bf16.msra.mxu0 %v3357_v33  ;;  %v3832_v33 = vld [vmem:[%s4175_s3 + $0x110] ss:$40 sps:$4 sm:$0xff]  }
 0x13e   : > { %1630 = vmatprep.subr.bf16.mxu1 %v3811_v27  ;;  %1674 = vmatprep.subr.bf16.mxu0 %v3371_v35  ;;  %v3839_v35 = vld [vmem:[%s4175_s3 + $0xc4] ss:$40 sps:$4 sm:$0xff]  }
 0x141   : > { %1631 = vmatpush1.bf16.msra.mxu1 %v3818_v29  ;;  %1675 = vmatpush1.bf16.msra.mxu0 %v3381_v37  ;;  %v3846_v37 = vld [vmem:[%s4175_s3 + $0xc0] ss:$40 sps:$4 sm:$0xff]  }
 0x142   : > { %1632 = vmatprep.subr.bf16.mxu1 %v3825_v31  ;;  %1676 = vmatprep.subr.bf16.mxu0 %v3395_v39  ;;  %v3853_v39 = vld [vmem:[%s4175_s3 + $0x74] ss:$40 sps:$4 sm:$0xff]  }
 0x145   : > { %1633 = vmatpush1.bf16.msra.mxu1 %v3832_v33  ;;  %1677 = vmatpush1.bf16.msra.mxu0 %v3405_v41  ;;  %v3860_v41 = vld [vmem:[%s4175_s3 + $0x70] ss:$40 sps:$4 sm:$0xff]  }
 0x146   : > { %1634 = vmatprep.subr.bf16.mxu1 %v3839_v35  ;;  %1678 = vmatprep.subr.bf16.mxu0 %v3419_v43  ;;  %v3867_v43 = vld [vmem:[%s4175_s3 + $0x24] ss:$40 sps:$4 sm:$0xff]  }
 0x149   : > { %1635 = vmatpush1.bf16.msra.mxu1 %v3846_v37  ;;  %1679 = vmatpush1.bf16.msra.mxu0 %v3429_v45  ;;  %v3874_v45 = vld [vmem:[%s4175_s3 + $0x20] ss:$40 sps:$4 sm:$0xff]  }
 0x14a   : > { %1636 = vmatprep.subr.bf16.mxu1 %v3853_v39  ;;  %1680 = vmatprep.subr.bf16.mxu0 %v3443_v47  ;;  %v3881_v47 = vrot.slane %v3650_v38, 3  ;;  %v3017_v38 = vld [vmem:[%s4177_s5 + $0x18] sm:$0xff]  }
 0x14d   : > { %1637 = vmatpush1.bf16.msra.mxu1 %v3860_v41  ;;  %1681 = vmatpush1.bf16.msra.mxu0 %v3453_v49  ;;  %v4215_v49 = vld [vmem:[#allocation7_spill] sm:$0xff] }
 0x14e   : > { %1638 = vmatprep.subr.bf16.mxu1 %v3867_v43  ;;  %1682 = vmatprep.subr.bf16.mxu0 %v3467_v51  ;;  %v4218_v51 = vld [vmem:[#allocation10_spill] sm:$0xff] }
 0x151   : > { %1639 = vmatpush1.bf16.msra.mxu1 %v3874_v45  ;;  %1683 = vmatpush1.bf16.msra.mxu0 %v3477_v53  ;;  %v4220_v53 = vld [vmem:[#allocation12_spill] sm:$0xff] }
 0x152   : > { %1709 = vmatprep.subr.bf16.mxu1 %v3304_v24  ;;  %1750 = vmatprep.subr.bf16.mxu0 %v3491_v55  ;;  %v4214_v24 = vld [vmem:[#allocation6_spill] sm:$0xff]  ;;  %v4221_v55 = vld [vmem:[#allocation13_spill] sm:$0xff] }
 0x154   : > { %1657 = vmatmul.mubr.bf16.vlgmr.msra.gmra.mxu1 %v3584_v4  ;;  %1701 = vmatmul.mubr.bf16.vlgmr.msra.gmra.mxu0 %v3881_v47  ;;  %v4223_v4 = vld [vmem:[#allocation15_spill] sm:$0xff] }
 0x155   : > { %1710 = vmatpush1.bf16.msra.mxu1 %v3314_v26  ;;  %1751 = vmatpush1.bf16.msra.mxu0 %v3577_v7  ;;  %v4216_v26 = vld [vmem:[#allocation8_spill] sm:$0xff]  ;;  %v4222_v7 = vld [vmem:[#allocation14_spill] sm:$0xff] }
 0x156   : > { %1711 = vmatprep.subr.bf16.mxu1 %v3328_v28  ;;  %1752 = vmatprep.subr.bf16.mxu0 %v3589_v3  ;;  %v4217_v28 = vld [vmem:[#allocation9_spill] sm:$0xff]  ;;  %v4224_v3 = vld [vmem:[#allocation16_spill] sm:$0xff] }
 0x157   : > { %1741 = vmatprep.mubr.bf16.mxu1 %v4213_v61  ;;  %1782 = vmatprep.mubr.bf16.mxu0 %v4213_v61 }
 0x159   : > { %1712 = vmatpush1.bf16.msra.mxu1 %v3338_v30  ;;  %1753 = vmatpush1.bf16.msra.mxu0 %v3605_v10  ;;  %v4219_v30 = vld [vmem:[#allocation11_spill] sm:$0xff]  ;;  %v4226_v10 = vld [vmem:[#allocation18_spill] sm:$0xff] }
 0x15a   : > { %1713 = vmatprep.subr.bf16.mxu1 %v4214_v24  ;;  %1754 = vmatprep.subr.bf16.mxu0 %v3617_v40  ;;  %v3012_v40 = vld [vmem:[%s4177_s5 + $0x70] sm:$0xff]  }
 0x15d   : > { %1714 = vmatpush1.bf16.msra.mxu1 %v4215_v49  ;;  %1755 = vmatpush1.bf16.msra.mxu0 %v3631_v18 }
 0x15e   : > { %1715 = vmatprep.subr.bf16.mxu1 %v4216_v26  ;;  %1756 = vmatprep.subr.bf16.mxu0 %v3643_v48 }
 0x161   : > { %1716 = vmatpush1.bf16.msra.mxu1 %v4217_v28  ;;  %1757 = vmatpush1.bf16.msra.mxu0 %v3657_v63 }
 0x162   : > { %1717 = vmatprep.subr.bf16.mxu1 %v4218_v51  ;;  %1758 = vmatprep.subr.bf16.mxu0 %v3669_v36  ;;  %v3018_v36 = vld [vmem:[%s4177_s5 + $0x58] sm:$0xff]  }
 0x165   : > { %1718 = vmatpush1.bf16.msra.mxu1 %v4219_v30  ;;  %1759 = vmatpush1.bf16.msra.mxu0 %v3681_v46  ;;  %v3020_v46 = vld [vmem:[%s4177_s5 + $0x50] sm:$0xff]  }
 0x166   : > { %1719 = vmatprep.subr.bf16.mxu1 %v4220_v53  ;;  %1760 = vmatprep.subr.bf16.mxu0 %v3693_v12  ;;  %v3022_v12 = vld [vmem:[%s4177_s5 + $0x48] sm:$0xff]  }
 0x169   : > { %1720 = vmatpush1.bf16.msra.mxu1 %v4221_v55  ;;  %1761 = vmatpush1.bf16.msra.mxu0 %v3705_v42  ;;  %v3024_v42 = vld [vmem:[%s4177_s5 + $0x40] sm:$0xff]  }
 0x16a   : > { %1721 = vmatprep.subr.bf16.mxu1 %v4222_v7  ;;  %1762 = vmatprep.subr.bf16.mxu0 %v3717_v32 }
 0x16d   : > { %1722 = vmatpush1.bf16.msra.mxu1 %v4223_v4  ;;  %1763 = vmatpush1.bf16.msra.mxu0 %v3729_v44 }
 0x16e   : > { %1723 = vmatprep.subr.bf16.mxu1 %v4224_v3  ;;  %1764 = vmatprep.subr.bf16.mxu0 %v3741_v54 }
 0x171   : > { %1724 = vmatpush1.bf16.msra.mxu1 %v4225_v14  ;;  %1765 = vmatpush1.bf16.msra.mxu0 %v3753_v19 }
 0x172   : > { %1791 = vmatprep.subr.bf16.mxu1 %v4226_v10  ;;  %1832 = vmatprep.subr.bf16.mxu0 %v3765_v57 }
 0x174   : > { %1742 = vmatmul.mubr.bf16.vlgmr.msra.gmra.mxu1 %v3881_v47  ;;  %1783 = vmatmul.mubr.bf16.vlgmr.msra.gmra.mxu0 %v3881_v47 }
 0x175   : > { %1792 = vmatpush1.bf16.msra.mxu1 %v3582_v20  ;;  %1833 = vmatpush1.bf16.msra.mxu0 %v3772_v11  ;;  %v3009_v20 = vld [vmem:[%s4177_s5 + $0x38] sm:$0xff]  }
 0x176   : > { %1793 = vmatprep.subr.bf16.mxu1 %v3594_v22  ;;  %1834 = vmatprep.subr.bf16.mxu0 %v3779_v13  ;;  %v3010_v22 = vld [vmem:[%s4177_s5 + $0x78] sm:$0xff]  }
 0x177   : > { %1823 = vmatprep.mubr.bf16.mxu1 %v4213_v61  ;;  %1864 = vmatprep.mubr.bf16.mxu0 %v4213_v61 }
 0x179   : > { %1794 = vmatpush1.bf16.msra.mxu1 %v3610_v58  ;;  %1835 = vmatpush1.bf16.msra.mxu0 %v3788_v9  ;;  %v3108_v58 = vmov 0.0  }
 0x17a   : > { %1795 = vmatprep.subr.bf16.mxu1 %v3622_v52  ;;  %1836 = vmatprep.subr.bf16.mxu0 %v3795_v23  ;;  %v3013_v52 = vld [vmem:[%s4177_s5 + $0x28] sm:$0xff]  }
 0x17d   : > { %1796 = vmatpush1.bf16.msra.mxu1 %v3636_v2  ;;  %1837 = vmatpush1.bf16.msra.mxu0 %v3804_v25 }
 0x17e   : > { %1797 = vmatprep.subr.bf16.mxu1 %v3648_v59  ;;  %1838 = vmatprep.subr.bf16.mxu0 %v3811_v27 }
 0x181   : > { %1798 = vmatpush1.bf16.msra.mxu1 %v3662_v21  ;;  %1839 = vmatpush1.bf16.msra.mxu0 %v3818_v29 }
 0x182   : > { %1799 = vmatprep.subr.bf16.mxu1 %v3674_v16  ;;  %1840 = vmatprep.subr.bf16.mxu0 %v3825_v31  ;;  %v3019_v16 = vld [vmem:[%s4177_s5 + $0x10] sm:$0xff]  }
 0x185   : > { %1800 = vmatpush1.bf16.msra.mxu1 %v3686_v50  ;;  %1841 = vmatpush1.bf16.msra.mxu0 %v3832_v33  ;;  %v3021_v50 = vld [vmem:[%s4177_s5 + $0x8] sm:$0xff]  }
 0x186   : > { %1801 = vmatprep.subr.bf16.mxu1 %v3698_v1  ;;  %1842 = vmatprep.subr.bf16.mxu0 %v3839_v35  ;;  %v3023_v1 = vld [vmem:[%s4177_s5] sm:$0xff]  }
 0x189   : > { %1802 = vmatpush1.bf16.msra.mxu1 %v3710_v6  ;;  %1843 = vmatpush1.bf16.msra.mxu0 %v3846_v37 }
 0x18a   : > { %1803 = vmatprep.subr.bf16.mxu1 %v3722_v34  ;;  %1844 = vmatprep.subr.bf16.mxu0 %v3853_v39 }
 0x18d   : > { %1804 = vmatpush1.bf16.msra.mxu1 %v3734_v56  ;;  %1845 = vmatpush1.bf16.msra.mxu0 %v3860_v41 }
 0x18e   : > { %1805 = vmatprep.subr.bf16.mxu1 %v3746_v0  ;;  %1846 = vmatprep.subr.bf16.mxu0 %v3867_v43 }
 0x191   : > { %1806 = vmatpush1.bf16.msra.mxu1 %v3758_v60  ;;  %1847 = vmatpush1.bf16.msra.mxu0 %v3874_v45 }
 0x192   : > { %2743 = vmatprep.subr.bf16.mxu0 %v3108_v58  ;;  %2723 = vmatprep.subr.bf16.mxu1 %v3108_v58 }
 0x194   : > { %1824 = vmatmul.mubr.bf16.vlgmr.msra.gmra.mxu1 %v3881_v47  ;;  %1865 = vmatmul.mubr.bf16.vlgmr.msra.gmra.mxu0 %v3881_v47 }
 0x195   : > { %2744 = vmatpush3.bf16.msra.mxu0 %v3009_v20  ;;  %2724 = vmatpush3.bf16.msra.mxu1 %v3010_v22 }
 0x196   : > { %2745 = vmatprep.subr.bf16.mxu0 %v3108_v58  ;;  %2725 = vmatprep.subr.bf16.mxu1 %v3108_v58 }
 0x197   : > { %2759 = vmatprep.mubr.msk.bf16.mxu0 %vm3109_vm6, %v3108_v58  ;;  %2739 = vmatprep.mubr.msk.bf16.mxu1 %vm3109_vm6, %v3108_v58 }
 0x199   : > { %2746 = vmatpush3.bf16.msra.mxu0 %v3011_v5  ;;  %2726 = vmatpush3.bf16.msra.mxu1 %v3012_v40 }
 0x19a   : > { %2747 = vmatprep.subr.bf16.mxu0 %v3108_v58  ;;  %2727 = vmatprep.subr.bf16.mxu1 %v3108_v58 }
 0x19d   : > { %2748 = vmatpush3.bf16.msra.mxu0 %v3013_v52  ;;  %2728 = vmatpush3.bf16.msra.mxu1 %v3014_v17 }
 0x19e   : > { %2749 = vmatprep.subr.bf16.mxu0 %v3108_v58  ;;  %2729 = vmatprep.subr.bf16.mxu1 %v3108_v58 }
 0x1a1   : > { %2750 = vmatpush3.bf16.msra.mxu0 %v3015_v15  ;;  %2730 = vmatpush3.bf16.msra.mxu1 %v3016_v8 }
 0x1a2   : > { %2751 = vmatprep.subr.bf16.mxu0 %v3108_v58  ;;  %2731 = vmatprep.subr.bf16.mxu1 %v3108_v58 }
 0x1a5   : > { %2752 = vmatpush3.bf16.msra.mxu0 %v3017_v38  ;;  %2732 = vmatpush3.bf16.msra.mxu1 %v3018_v36 }
 0x1a6   : > { %2753 = vmatprep.subr.bf16.mxu0 %v3108_v58  ;;  %2733 = vmatprep.subr.bf16.mxu1 %v3108_v58 }
 0x1a9   : > { %2754 = vmatpush3.bf16.msra.mxu0 %v3019_v16  ;;  %2734 = vmatpush3.bf16.msra.mxu1 %v3020_v46 }
 0x1aa   : > { %2755 = vmatprep.subr.bf16.mxu0 %v3108_v58  ;;  %2735 = vmatprep.subr.bf16.mxu1 %v3108_v58 }
 0x1ad   : > { %2756 = vmatpush3.bf16.msra.mxu0 %v3021_v50  ;;  %2736 = vmatpush3.bf16.msra.mxu1 %v3022_v12 }
 0x1ae   : > { %2757 = vmatprep.subr.bf16.mxu0 %v3108_v58  ;;  %2737 = vmatprep.subr.bf16.mxu1 %v3108_v58 }
 0x1b1   : > { %2758 = vmatpush3.bf16.msra.mxu0 %v3023_v1  ;;  %2738 = vmatpush3.bf16.msra.mxu1 %v3024_v42 }
 0x1b2   : > { %2783 = vmatprep.subr.bf16.mxu0 %v3108_v58  ;;  %2763 = vmatprep.subr.bf16.mxu1 %v3108_v58 }
 0x1d4   : > { %v3983_v61 = vpop.f32.mrf.mxu1  ;;  %v1535_v62 = vpop.f32.mrf.mxu0 }
 0x1d5   : > { %v1901_v60 = vrot.slane %v1535_v62, 1 }
 0x1d6   : > { %v3988_v18 = vpop.f32.mrf.mxu1  ;;  %v1537_v2 = vpop.f32.mrf.mxu0 }
 0x1d7   : > { %v1918_v13 = vrot.slane %v1537_v2, 1 }
 0x1d8   : > { %v1498_v48 = vpop.f32.mrf.mxu1  ;;  %v1539_v59 = vpop.f32.mrf.mxu0 }
 0x1da   : > { %v1499_v63 = vpop.f32.mrf.mxu1  ;;  %v1540_v21 = vpop.f32.mrf.mxu0 }
 0x1f4   : > { %v1576_v6 = vpop.f32.mrf.mxu1  ;;  %v1617_v32 = vpop.f32.mrf.mxu0 }
 0x1f5   : > { %v1909_v47 = vrot.slane %v1617_v32, 2  ;;  %v1875_v14 = vrot.slane %v1576_v6, 1  ;;  %v2640_v32 = vld [vmem:[%s4176_s4] ss:$0 sm:$0xff] }
 0x1f6   : > { %v1578_v34 = vpop.f32.mrf.mxu1  ;;  %v1619_v44 = vpop.f32.mrf.mxu0 }
 0x1f7   : > { %v1926_v51 = vrot.slane %v1619_v44, 2  ;;  %v1888_v5 = vrot.slane %v1578_v34, 1 }
 0x1f8   : > { %v1580_v56 = vpop.f32.mrf.mxu1  ;;  %v1621_v54 = vpop.f32.mrf.mxu0 }
 0x1f9   : > { %v3025_v54 = vld [vmem:[%s4177_s5 + $0xf8] sm:$0xff]  }
 0x1fa   : > { %v1581_v0 = vpop.f32.mrf.mxu1  ;;  %v1622_v19 = vpop.f32.mrf.mxu0 }
 0x1fb   : > { %v3026_v19 = vld [vmem:[%s4177_s5 + $0xb8] sm:$0xff]  }
 0x214   : > { %v1658_v57 = vpop.f32.mrf.mxu1  ;;  %v1702_v11 = vpop.f32.mrf.mxu0 }
 0x215   : > { %v1903_v9 = vadd.f32 %v1901_v60, %v1702_v11  ;;  %v1883_v15 = vrot.slane %v1658_v57, 2  ;;  %v3027_v57 = vld [vmem:[%s4177_s5 + $0xf0] sm:$0xff]  }
 0x216   : > { %v1660_v23 = vpop.f32.mrf.mxu1  ;;  %v1704_v25 = vpop.f32.mrf.mxu0  ;;  %v3028_v11 = vld [vmem:[%s4177_s5 + $0xb0] sm:$0xff]  }
 0x217   : > { %v1920_v27 = vadd.f32 %v1918_v13, %v1704_v25  ;;  %v1896_v63 = vrot.slane %v1660_v23, 2  ;;  %v3029_v13 = vld [vmem:[%s4177_s5 + $0xe8] sm:$0xff]   ;;  %v3031_v23 = vld [vmem:[%s4177_s5 + $0xe0] sm:$0xff]  }
 0x218   : > { %v1662_v29 = vpop.f32.mrf.mxu1  ;;  %v1706_v31 = vpop.f32.mrf.mxu0  ;;  %v3032_v25 = vld [vmem:[%s4177_s5 + $0xa0] sm:$0xff]  }
 0x219   : > { %v3034_v29 = vld [vmem:[%s4177_s5 + $0x98] sm:$0xff]   ;;  %v3035_v31 = vld [vmem:[%s4177_s5 + $0xd0] sm:$0xff]  }
 0x21a   : > { %v1663_v33 = vpop.f32.mrf.mxu1  ;;  %v1707_v35 = vpop.f32.mrf.mxu0 }
 0x21b   : > { %v3036_v33 = vld [vmem:[%s4177_s5 + $0x90] sm:$0xff]   ;;  %v3037_v35 = vld [vmem:[%s4177_s5 + $0xc8] sm:$0xff]  }
 0x234   : > { %v1743_v37 = vpop.f32.mrf.mxu1  ;;  %v1784_v39 = vpop.f32.mrf.mxu0 }
 0x235   : > { %v1905_v41 = vrot.slane %v1784_v39, 1  ;;  %v1873_v3 = vadd.f32 %v1743_v37, %v3983_v61  ;;  %v3038_v37 = vld [vmem:[%s4177_s5 + $0x88] sm:$0xff]   ;;  %v3039_v39 = vld [vmem:[%s4177_s5 + $0xc0] sm:$0xff]  }
 0x236   : > { %v1745_v43 = vpop.f32.mrf.mxu1  ;;  %v1786_v45 = vpop.f32.mrf.mxu0 }
 0x237   : > { %v1907_v24 = vadd.f32 %v1905_v41, %v1903_v9  ;;  %v1922_v49 = vrot.slane %v1786_v45, 1  ;;  %v1886_v10 = vadd.f32 %v1745_v43, %v3988_v18  ;;  %v1877_v40 = vadd.f32 %v1875_v14, %v1873_v3  ;;  %v3030_v9 = vld [vmem:[%s4177_s5 + $0xa8] sm:$0xff]   ;;  %v3040_v41 = vld [vmem:[%s4177_s5 + $0x80] sm:$0xff]  }
 0x238   : > { %v1747_v26 = vpop.f32.mrf.mxu1  ;;  %v1788_v28 = vpop.f32.mrf.mxu0 }
 0x239   : > { %v1924_v30 = vadd.f32 %v1922_v49, %v1920_v27  ;;  %v1911_v53 = vadd.f32 %v1909_v47, %v1907_v24  ;;  %v1890_v2 = vadd.f32 %v1888_v5, %v1886_v10  ;;  %v3033_v27 = vld [vmem:[%s4177_s5 + $0xd8] sm:$0xff]   ;;  %v3042_v24 = vld [vmem:[%s4179_s7 + $0x10] sm:$0xff]   ;;  %v3043_v49 = vld [vmem:[%s4179_s7 + $0x8] sm:$0xff]  }
 0x23a   : > { %v1748_v55 = vpop.f32.mrf.mxu1  ;;  %v1789_v7 = vpop.f32.mrf.mxu0  ;;  %v3041_v47 = vld [vmem:[%s4179_s7 + $0x18] sm:$0xff]   ;;  %v3044_v26 = vld [vmem:[%s4179_s7] sm:$0xff]  }
 0x23b   : > { %v1928_v4 = vadd.f32 %v1926_v51, %v1924_v30  ;;  %v2371_v5 = vld [vmem:[%s4178_s6] sm:$0x1] }
 0x254   : > { %v1825_v20 = vpop.f32.mrf.mxu1  ;;  %v1866_v22 = vpop.f32.mrf.mxu0 }
 0x255   : > { %v1879_v52 = vrot.slane %v1825_v20, 1  ;;  %v1913_v36 = vrot.slane %v1866_v22, 2 }
 0x256   : > { %v1827_v17 = vpop.f32.mrf.mxu1  ;;  %v1868_v62 = vpop.f32.mrf.mxu0 }
 0x257   : > { %v1881_v8 = vadd.f32 %v1879_v52, %v1877_v40  ;;  %v1892_v48 = vrot.slane %v1827_v17, 1  ;;  %v1930_v50 = vrot.slane %v1868_v62, 2  ;;  %v1915_v12 = vadd.f32 %v1913_v36, %v1911_v53 }
 0x258   : > { %v1829_v59 = vpop.f32.mrf.mxu1  ;;  %v1870_v38 = vpop.f32.mrf.mxu0 }
 0x259   : > { %v1885_v21 = vadd.f32 %v1883_v15, %v1881_v8  ;;  %v1894_v61 = vadd.f32 %v1892_v48, %v1890_v2  ;;  %v1932_v6 = vadd.f32 %v1930_v50, %v1928_v4  ;;  %v2383_v38 = vld [vmem:[%s4180_s8] sm:$0x1] }
 0x25a   : > { %v1830_v16 = vpop.f32.mrf.mxu1  ;;  %v1871_v46 = vpop.f32.mrf.mxu0 }
 0x25b   : > { %v1898_v18 = vadd.f32 %v1896_v63, %v1894_v61 }
 0x25d   : > { %v1899_v1 = vmax.f32 %v1885_v21, %v1898_v18 }
 0x25f   : > { %v1916_v42 = vmax.f32 %v1899_v1, %v1915_v12 }
 0x261   : > { %v1933_v34 = vmax.f32 %v1916_v42, %v1932_v6 }
 0x263   : > { %v1941_v44 = vadd.f32 %v2640_v32, %v1933_v34 }
 0x265   : > { %v1942_v56 = vmax.f32 %v1941_v44, 0.0 }
 0x267   : > { %v1943_v0 = vpack.c.bf16 %v1942_v56, %v1942_v56 }
 0x269   : > { %2760 = vmatmul.mubr.bf16.vlgmr.msra.gmra.mxu0 %v1943_v0  ;;  %v2009_v60 = vshrl.u32 %v1943_v0, 16  ;;  %v2189_v45 = vrot.slane %v1943_v0, 1 }
 0x26a   : > { %2784 = vmatpush3.bf16.msra.mxu0 %v3025_v54  ;;  %2799 = vmatprep.mubr.msk.bf16.mxu0 %vm3109_vm6, %v3108_v58 }
 0x26b   : > { %2740 = vmatmul.mubr.bf16.vlgmr.msra.gmra.mxu1 %v2009_v60  ;;  %2785 = vmatprep.subr.bf16.mxu0 %v3108_v58  ;;  %v2280_v43 = vrot.slane %v2009_v60, 1 }
 0x26c   : > { %2764 = vmatpush3.bf16.msra.mxu1 %v3026_v19  ;;  %2779 = vmatprep.mubr.msk.bf16.mxu1 %vm3109_vm6, %v3108_v58 }
 0x26d   : > { %2765 = vmatprep.subr.bf16.mxu1 %v3108_v58 }
 0x26e   : > { %2786 = vmatpush3.bf16.msra.mxu0 %v3027_v57 }
 0x26f   : > { %2787 = vmatprep.subr.bf16.mxu0 %v3108_v58 }
 0x270   : > { %2766 = vmatpush3.bf16.msra.mxu1 %v3028_v11 }
 0x271   : > { %2767 = vmatprep.subr.bf16.mxu1 %v3108_v58 }
 0x272   : > { %2788 = vmatpush3.bf16.msra.mxu0 %v3029_v13 }
 0x273   : > { %2789 = vmatprep.subr.bf16.mxu0 %v3108_v58 }
 0x274   : > { %2768 = vmatpush3.bf16.msra.mxu1 %v3030_v9 }
 0x275   : > { %2769 = vmatprep.subr.bf16.mxu1 %v3108_v58 }
 0x276   : > { %2790 = vmatpush3.bf16.msra.mxu0 %v3031_v23 }
 0x277   : > { %2791 = vmatprep.subr.bf16.mxu0 %v3108_v58 }
 0x278   : > { %2770 = vmatpush3.bf16.msra.mxu1 %v3032_v25 }
 0x279   : > { %2771 = vmatprep.subr.bf16.mxu1 %v3108_v58 }
 0x27a   : > { %2792 = vmatpush3.bf16.msra.mxu0 %v3033_v27 }
 0x27b   : > { %2793 = vmatprep.subr.bf16.mxu0 %v3108_v58 }
 0x27c   : > { %2772 = vmatpush3.bf16.msra.mxu1 %v3034_v29 }
 0x27d   : > { %2773 = vmatprep.subr.bf16.mxu1 %v3108_v58 }
 0x27e   : > { %2794 = vmatpush3.bf16.msra.mxu0 %v3035_v31 }
 0x27f   : > { %2795 = vmatprep.subr.bf16.mxu0 %v3108_v58 }
 0x280   : > { %2774 = vmatpush3.bf16.msra.mxu1 %v3036_v33 }
 0x281   : > { %2775 = vmatprep.subr.bf16.mxu1 %v3108_v58 }
 0x282   : > { %2796 = vmatpush3.bf16.msra.mxu0 %v3037_v35 }
 0x283   : > { %2797 = vmatprep.subr.bf16.mxu0 %v3108_v58 }
 0x284   : > { %2776 = vmatpush3.bf16.msra.mxu1 %v3038_v37 }
 0x285   : > { %2777 = vmatprep.subr.bf16.mxu1 %v3108_v58 }
 0x286   : > { %2798 = vmatpush3.bf16.msra.mxu0 %v3039_v39 }
 0x288   : > { %2778 = vmatpush3.bf16.msra.mxu1 %v3040_v41 }
 0x289   : > { %2800 = vmatmul.mubr.bf16.vlgmr.msra.gmra.mxu0 %v2280_v43  ;;  %2803 = vmatprep.subr.bf16.mxu1 %v3108_v58 }
 0x28b   : > { %2780 = vmatmul.mubr.bf16.vlgmr.msra.gmra.mxu1 %v2189_v45 }
 0x28c   : > { %2811 = vmatprep.mubr.msk.bf16.mxu1 %vm3109_vm6, %v3108_v58  ;;  %2804 = vmatpush3.bf16.msra.mxu1 %v3041_v47 }
 0x28d   : > { %2805 = vmatprep.subr.bf16.mxu1 %v3108_v58 }
 0x290   : > { %2806 = vmatpush3.bf16.msra.mxu1 %v3042_v24 }
 0x291   : > { %2807 = vmatprep.subr.bf16.mxu1 %v3108_v58 }
 0x294   : > { %2808 = vmatpush3.bf16.msra.mxu1 %v3043_v49 }
 0x295   : > { %2809 = vmatprep.subr.bf16.mxu1 %v3108_v58 }
 0x298   : > { %2810 = vmatpush3.bf16.msra.mxu1 %v3044_v26 }
 0x329   : > { %v2182_v28 = vpop.f32.mrf.mxu0 }
 0x32b   : > { %v2094_v51 = vpop.f32.mrf.mxu1  ;;  %v2761_v30 = vpop.f32.mrf.mxu0 }
 0x32c   : > { %v2183_v10 = vadd.f32 %v2182_v28, %v2094_v51 }
 0x32d   : > { %v2741_v53 = vpop.f32.mrf.mxu1  ;;  %v2185_v55 = vpop.f32.mrf.mxu0 }
 0x32f   : > { %v2097_v7 = vpop.f32.mrf.mxu1  ;;  %v2762_v4 = vpop.f32.mrf.mxu0 }
 0x331   : > { %v2742_v3 = vpop.f32.mrf.mxu1 }
 0x349   : > { %v2364_v14 = vpop.f32.mrf.mxu0 }
 0x34b   : > { %v2273_v20 = vpop.f32.mrf.mxu1  ;;  %v2801_v22 = vpop.f32.mrf.mxu0 }
 0x34c   : > { %v2279_v58 = vadd.f32 %v2273_v20, %v2183_v10 }
 0x34d   : > { %v2781_v40 = vpop.f32.mrf.mxu1  ;;  %v2367_v52 = vpop.f32.mrf.mxu0 }
 0x34e   : > { %v2370_v17 = vadd.f32 %v2364_v14, %v2279_v58 }
 0x34f   : > { %v2276_v62 = vpop.f32.mrf.mxu1  ;;  %v2802_v15 = vpop.f32.mrf.mxu0 }
 0x350   : > { %v2372_v2 = vadd.f32 %v2371_v5, %v2370_v17 }
 0x351   : > { %v2782_v8 = vpop.f32.mrf.mxu1 }
 0x352   : > { %v2373_v48 = vmax.f32 %v2372_v2, 0.0 }
 0x354   : > { %v2374_v59 = vpack.c.bf16 %v2373_v48, %v2373_v48 }
 0x356   : > { %2812 = vmatmul.mubr.msk.bf16.vlgmr.msra.gmra.mxu1 %vm2408_vm7, %v2374_v59 }
 0x416   : > { %v2446_v63 = vpop.f32.mrf.mxu1 }
 0x417   : > { %v2447_v21 = vadd.f32 %v2446_v63, %v2383_v38 }
 0x418   : > { %v2813_v36 = vpop.f32.mrf.mxu1 }
 0x419   : > { %2452 = vst [vmem:[%s324_s25] sm:$0x1] %v2447_v21 }
 0x41a   : > { %v2449_v61 = vpop.f32.mrf.mxu1 }
 0x41b   : > { %3058 = shalt.err (!%p3055_p3)
}
 0x41c   : > { %s3059_s29 = scalar_lea.hbm %s4131_s26, 16  ;;  %s3063_s23 = scalar_lea.hbm %s4181_s9, 32 }
 0x41d   : > { %p3060_p4 = scmp.ne.s32.totalorder %s4131_s26, %s3059_s29  ;;  %p3064_p9 = scmp.lt.s32.totalorder %s4131_s26, %s4181_s9 }
 0x41e   : > { %p3065_p10 = scmp.lt.s32.totalorder %s3063_s23, %s3059_s29 }
 0x41f   : > { %p3061_p7 = pnand %p3060_p4, %p3199_p5 }
 0x420   : > { %p3066_p11 = por %p3065_p10, %p3064_p9 }
 0x421   : > { %p3062_p8 = pneg %p3061_p7 }
 0x423   : > { %p3067_p12 = pnand %p3066_p11, %p3062_p8 }
 0x425   : > { %3070 = shalt.err (!%p3067_p12)
}
 0x426   : > { %2815 = dma.vmem_to_hbm [thread:$0]  (%p3199_p5), %s4133_s24, 16, %s4131_s26, %s2454_s27   ;;  %v2814_v16 = vpop.f32.mrf.mxu1 }
 0x427 PF: > { %p2821_p13 = scmp.ge.s32.totalorder %s3105_s12, 2  ;;  %s2478_s14 = sand.u32 1, %s3093_s30  }
 0x428   : > { %s2479_s28 = scalar_lea.sflag [#allocation3], %s2478_s14 }
 0x429   : > { %p2818_p0 = pnand %p2821_p13, %p3203_p6 }
 0x42b   : > { %p2819_p1 = pneg %p2818_p0 }
 0x42d   : > { %3088 = dma.done.wait (%p2819_p1), %s2479_s28, 16  }
 0x42e   : > { %3090 = vsyncadd (%p2819_p1), %s2479_s28, 4294967280  ;;  %s4227_s19 = sld [smem:[#allocation5_spill]]  ;;  %p19_p2 = scmp.ge.s32.totalorder %s3186_s15, 4  }
 0x42f   : > { %s4228_s30 = smov %s3097_s10  ;;  %s4229_s10 = smov %s3101_s11 }
 0x430   : > { %s4231_s12 = smov %s3186_s15  ;;  %21 = sbr.rel (!%p19_p2) target bundleno = 3 (0x3), region = 91 }
 0x434   : > { %s4230_s11 = smov %s4227_s19 }
 0x435   :  { %2483 = vsyncpa [#allocation3], 1 }
 0x436   :  { %2485 = vsyncpa [#allocation3 + $0x1], 1 }

</bundles_post_ra>
